<compile_context>
chip_gen: v6e
topology: v6e:2x2x1
jax: 0.10.0
libtpu: 0.0.40
codegen_flags: <defaults>
</compile_context>

<pallas_src>
import functools

import jax
import jax.numpy as jnp
from jax.experimental import pallas as pl
from jax.experimental.pallas import tpu as pltpu

KEY_OUTPUT = "probs"
BN_EPS = 1e-5
LANE = 128
VMEM_LIMIT = 48 * 1024 * 1024  # <= 48 MiB: headroom on v7x (64 MiB physical)


# ----------------------------------------------------------------------------
# small helpers
# ----------------------------------------------------------------------------
def _round_up(x, m):
    return (x + m - 1) // m * m


def _pick_m_tile(m):
    mp = _round_up(m, 8)
    if mp <= 1024:
        return mp, mp
    for tm in (1024, 512, 256):
        if mp % tm == 0:
            return mp, tm
    tm = 512
    return _round_up(mp, tm), tm


def _pick_n_tile(n):
    for t in (512, 256, 128):
        if n >= t and n % t == 0:
            return t
    return n


def _pick_k_tile(k):
    if k <= 512:
        return k
    for t in (512, 256, 128):
        if k % t == 0:
            return t
    return k


def _pad2(a, rows, cols):
    return jnp.pad(a, ((0, rows - a.shape[0]), (0, cols - a.shape[1])))


# ----------------------------------------------------------------------------
# Pallas kernels
# ----------------------------------------------------------------------------
def _matmul_bias_kernel(x_ref, w_ref, b_ref, o_ref, acc_ref, *, relu):
    """Tiled (M,K)@(K,N) with f32 accumulator; bias (+ReLU) epilogue on last K."""
    k = pl.program_id(2)

    @pl.when(k == 0)
    def _():
        acc_ref[...] = jnp.zeros_like(acc_ref)

    acc_ref[...] += jnp.dot(x_ref[...], w_ref[...],
                            preferred_element_type=jnp.float32)

    @pl.when(k == pl.num_programs(2) - 1)
    def _():
        y = acc_ref[...] + b_ref[...]
        if relu:
            y = jnp.maximum(y, 0.0)
        o_ref[...] = y.astype(o_ref.dtype)


def matmul_affine(x, w, bias, relu, out_dtype=jnp.bfloat16):
    """MXU matmul fused with per-channel bias (+ReLU).  Scale pre-folded into w."""
    m, k = x.shape
    kw, n = w.shape
    assert k == kw and n % LANE == 0

    mp, tm = _pick_m_tile(m)
    tn = _pick_n_tile(n)
    tk = _pick_k_tile(k)
    if mp != m:
        x = jnp.pad(x, ((0, mp - m), (0, 0)))
    nm, nn, nk = mp // tm, n // tn, k // tk

    out = pl.pallas_call(
        functools.partial(_matmul_bias_kernel, relu=relu),
        out_shape=jax.ShapeDtypeStruct((mp, n), out_dtype),
        grid=(nm, nn, nk),
        in_specs=[
            pl.BlockSpec((tm, tk), lambda i, j, kk: (i, kk)),
            pl.BlockSpec((tk, tn), lambda i, j, kk: (kk, j)),
            pl.BlockSpec((1, tn), lambda i, j, kk: (0, j)),
        ],
        out_specs=pl.BlockSpec((tm, tn), lambda i, j, kk: (i, j)),
        scratch_shapes=[pltpu.VMEM((tm, tn), jnp.float32)],
        compiler_params=pltpu.CompilerParams(
            dimension_semantics=("parallel", "parallel", "arbitrary"),
            vmem_limit_bytes=VMEM_LIMIT),
    )(x, w, bias)
    return out[:m] if mp != m else out


def _dw_pw_kernel(x_ref, dww_ref, dwb_ref, pww_ref, pwb_ref, o_ref,
                  *, tap_off, m, pool):
    """Fused depthwise 3x3 (+bias+ReLU) -> pointwise 1x1 (+bias+ReLU).

    x_ref block is (1, S, Cin) bf16 where each of the 9 depthwise taps is a
    contiguous, statically-offset row range of length m (stride / halo handled
    on the host).  Depthwise taps run on the VPU (f32 accum, tree sum), the
    pointwise matmul runs on the MXU (bf16 x bf16 -> f32).  `pool=True` emits
    the global-average-pooled features instead of the spatial map.
    """
    w = dww_ref[...]                                      # (9, Cin) f32, scale folded
    prods = []
    for t in range(9):
        tap = x_ref[0, tap_off[t]:tap_off[t] + m, :]      # (m, Cin) bf16
        # TODO(synk): on v6e/v7x bf16 products would further cut VALU pressure.
        prods.append(tap.astype(jnp.float32) * w[t:t + 1, :])
    while len(prods) > 1:                                 # pairwise tree sum
        nxt = [a + b for a, b in zip(prods[0::2], prods[1::2])]
        if len(prods) % 2:
            nxt.append(prods[-1])
        prods = nxt
    dw = jnp.maximum(prods[0] + dwb_ref[...], 0.0)        # (m, Cin) f32

    y = jnp.dot(dw.astype(jnp.bfloat16), pww_ref[...],
                preferred_element_type=jnp.float32)       # (m, Cout) f32
    y = jnp.maximum(y + pwb_ref[...], 0.0)

    if pool:
        o_ref[0, :, :] = jnp.mean(y, axis=0, keepdims=True).astype(o_ref.dtype)
    else:
        o_ref[0, :, :] = y.astype(o_ref.dtype)


# ----------------------------------------------------------------------------
# Host-side glue: stem patch extraction and depthwise tap layout (data movement)
# ----------------------------------------------------------------------------
def _extract_patches(x_nhwc, stride):
    """3x3, pad=1 patch extraction for the stem conv (cin is tiny)."""
    n, h, w, c = x_nhwc.shape
    xp = jnp.pad(x_nhwc, ((0, 0), (1, 1), (1, 1), (0, 0)))
    hout = (h - 1) // stride + 1
    wout = (w - 1) // stride + 1
    taps = []
    for ki in range(3):
        for kj in range(3):
            taps.append(
                xp[:, ki:ki + (hout - 1) * stride + 1:stride,
                      kj:kj + (wout - 1) * stride + 1:stride, :])
    return taps, hout, wout


def _prep_dw_input(x, stride):
    """Build a flattened (N, S, C) bf16 tensor in which every depthwise tap is a
    contiguous row range of length Hout*Wout.  Only 3 column taps are
    replicated (vs 9x full im2col); row taps are contiguous slices in-kernel.
    Returns (xflat, tap_offsets[9], hout, wout)."""
    n, hin, win, c = x.shape
    hout = (hin - 1) // stride + 1
    wout = (win - 1) // stride + 1
    segs, tap_off = [], [0] * 9
    if stride == 1:
        xp = jnp.pad(x, ((0, 0), (1, 1), (1, 1), (0, 0)))      # (n, hin+2, win+2, c)
        row_acc = 0
        for kj in range(3):
            segs.append(xp[:, :, kj:kj + wout, :])             # (n, hin+2, wout, c)
            for ki in range(3):
                tap_off[ki * 3 + kj] = (row_acc + ki) * wout
            row_acc += hin + 2
    else:  # stride == 2: split rows by parity so all row taps are contiguous
        hp = 2 * hout + 1
        xp = jnp.pad(x, ((0, 0), (1, hp - hin - 1), (1, 1), (0, 0)))  # (n, hp, win+2, c)
        row_acc = 0
        for p in range(2):
            rows = hout + 1 - p
            for kj in range(3):
                segs.append(xp[:, p::2, kj:kj + 2 * (wout - 1) + 1:2, :])
                if p == 0:
                    tap_off[0 * 3 + kj] = (row_acc + 0) * wout   # ki = 0
                    tap_off[2 * 3 + kj] = (row_acc + 1) * wout   # ki = 2
                else:
                    tap_off[1 * 3 + kj] = (row_acc + 0) * wout   # ki = 1
                row_acc += rows
    xcat = jnp.concatenate(segs, axis=1)                       # (n, rows, wout, c)
    xflat = xcat.reshape(n, xcat.shape[1] * wout, c)           # free host reshape
    return xflat, tuple(tap_off), hout, wout


def conv3x3_bn_relu(x, w2, bias, stride):
    """Stem: standard 3x3 conv (im2col + tiled MXU matmul) + folded BN + ReLU."""
    n, _, _, cin = x.shape
    cout = w2.shape[1]
    taps, hout, wout = _extract_patches(x, stride)
    m = n * hout * wout
    patches = jnp.concatenate([t.reshape(m, cin) for t in taps], axis=-1)
    if patches.shape[1] != w2.shape[0]:      # K padded to a sublane multiple
        patches = jnp.pad(patches, ((0, 0), (0, w2.shape[0] - patches.shape[1])))
    y = matmul_affine(patches, w2, bias, relu=True, out_dtype=jnp.bfloat16)
    return y.reshape(n, hout, wout, cout)


def dw_pw_block(x, blk, pool):
    """Fused depthwise-separable block: dw3x3+BN+ReLU -> pw1x1+BN+ReLU.
    If `pool`, also fuses the global average pool (outputs (N, Cout))."""
    n, _, _, c = x.shape
    cout = blk["pw_w"].shape[1]
    xflat, tap_off, hout, wout = _prep_dw_input(x, blk["stride"])
    m = hout * wout
    s_len = xflat.shape[1]

    if pool:
        out_shape = jax.ShapeDtypeStruct((n, 1, cout), jnp.bfloat16)
        out_spec = pl.BlockSpec((1, 1, cout), lambda i: (i, 0, 0))
    else:
        out_shape = jax.ShapeDtypeStruct((n, m, cout), jnp.bfloat16)
        out_spec = pl.BlockSpec((1, m, cout), lambda i: (i, 0, 0))

    # TODO(synk): for large spatial maps, tile the grid over halo'd row strips
    # (pl.ANY + manual DMA) instead of one whole image per grid step.
    out = pl.pallas_call(
        functools.partial(_dw_pw_kernel, tap_off=tap_off, m=m, pool=pool),
        out_shape=out_shape,
        grid=(n,),   # >= 2 batch elements keeps both v7x TensorCores busy
        in_specs=[
            pl.BlockSpec((1, s_len, c), lambda i: (i, 0, 0)),
            pl.BlockSpec((9, c), lambda i: (0, 0)),
            pl.BlockSpec((1, c), lambda i: (0, 0)),
            pl.BlockSpec((c, cout), lambda i: (0, 0)),
            pl.BlockSpec((1, cout), lambda i: (0, 0)),
        ],
        out_specs=out_spec,
        compiler_params=pltpu.CompilerParams(
            dimension_semantics=("parallel",),
            vmem_limit_bytes=VMEM_LIMIT),
    )(xflat, blk["dw_w"], blk["dw_bias"], blk["pw_w"], blk["pw_bias"])

    if pool:
        return out.reshape(n, cout)
    return out.reshape(n, hout, wout, cout)


# ----------------------------------------------------------------------------
# Parameter construction (deterministic synthetic init, eval-mode BN folded)
# ----------------------------------------------------------------------------
def _make_divisible(v, divisor, min_value=None):
    if min_value is None:
        min_value = divisor
    new_v = max(min_value, int(v + divisor / 2) // divisor * divisor)
    if new_v < 0.9 * v:
        new_v += divisor
    return new_v


def _bn_fold(key, c):
    k1, k2, k3, k4 = jax.random.split(key, 4)
    gamma = 1.0 + 0.1 * jax.random.normal(k1, (c,), jnp.float32)
    beta = 0.1 * jax.random.normal(k2, (c,), jnp.float32)
    mean = 0.1 * jax.random.normal(k3, (c,), jnp.float32)
    var = 0.5 + jax.random.uniform(k4, (c,), jnp.float32)
    scale = gamma / jnp.sqrt(var + BN_EPS)
    bias = beta - mean * scale
    return scale.reshape(1, c), bias.reshape(1, c)


def init_params(key, in_planes, base_planes, layer_planes, strides, num_classes,
                width_multiplier=1.0, round_nearest=8):
    base = _make_divisible(base_planes * width_multiplier, round_nearest)
    planes = [_make_divisible(p * width_multiplier, round_nearest) for p in layer_planes]
    feature_dims = _make_divisible(planes[-1], round_nearest)

    base_p = _round_up(base, LANE)
    planes_p = [_round_up(p, LANE) for p in planes]
    nc_p = _round_up(num_classes, LANE)

    keys = iter(jax.random.split(key, 4 + 4 * len(planes)))
    params = {"num_classes": num_classes}

    # Stem: conv 3x3 stride 2 (no bias) + BN + ReLU.  BN scale folded into w.
    w = 0.1 * jax.random.normal(next(keys), (3, 3, in_planes, base), jnp.float32)
    w2 = w.reshape(9 * in_planes, base)                       # tap-major, cin-minor
    s, b = _bn_fold(next(keys), base)
    params["stem_w"] = _pad2(w2 * s, _round_up(9 * in_planes, 8),
                             base_p).astype(jnp.bfloat16)
    params["stem_bias"] = _pad2(b, 1, base_p)

    blocks = []
    cin, cin_p = base, base_p
    for cout, cout_p, stride in zip(planes, planes_p, strides):
        blk = {"stride": int(stride)}
        dw = 0.1 * jax.random.normal(next(keys), (3, 3, cin), jnp.float32).reshape(9, cin)
        s, b = _bn_fold(next(keys), cin)
        blk["dw_w"] = _pad2(dw * s, 9, cin_p)                 # f32, scale folded
        blk["dw_bias"] = _pad2(b, 1, cin_p)
        pw = 0.1 * jax.random.normal(next(keys), (cin, cout), jnp.float32)
        s, b = _bn_fold(next(keys), cout)
        blk["pw_w"] = _pad2(pw * s, cin_p, cout_p).astype(jnp.bfloat16)
        blk["pw_bias"] = _pad2(b, 1, cout_p)
        blocks.append(blk)
        cin, cin_p = cout, cout_p
    params["blocks"] = blocks

    # Head FC (nn.Linear(feature_dims, num_classes), normal(0, 0.01) / zeros init).
    fd_p = _round_up(feature_dims, LANE)
    fc_w = 0.01 * jax.random.normal(next(keys), (feature_dims, num_classes), jnp.float32)
    params["fc_w"] = _pad2(fc_w, fd_p, nc_p).astype(jnp.bfloat16)
    params["fc_b"] = _pad2(jnp.zeros((1, num_classes), jnp.float32), 1, nc_p)
    return params


# ----------------------------------------------------------------------------
# Forward pass (MobileNetV1Recognizer.forward)
# ----------------------------------------------------------------------------
def mobilenet_v1_forward(params, x_nchw):
    # NCHW (PyTorch convention) -> NHWC (kernel layout); bf16 activations.
    x = jnp.transpose(x_nchw, (0, 2, 3, 1)).astype(jnp.bfloat16)

    # Backbone: stem conv + depthwise-separable blocks (dw+pw fused per block).
    x = conv3x3_bn_relu(x, params["stem_w"], params["stem_bias"], stride=2)
    blocks = params["blocks"]
    for bi, blk in enumerate(blocks):
        x = dw_pw_block(x, blk, pool=(bi == len(blocks) - 1))

    # Head: global average pool already fused into the last block.
    # TODO(synk): dropout omitted (dropout_rate=0.0 -> identity at inference).
    logits = matmul_affine(x, params["fc_w"], params["fc_b"],
                           relu=False, out_dtype=jnp.float32)
    logits = logits[:, :params["num_classes"]]   # strip lane padding

    return {KEY_OUTPUT: logits}


if __name__ == "__main__":
    # Small, module-consistent configuration: NCHW input [2, 3, 16, 16],
    # reduced layer stack (same block structure as MobileNetV1).
    in_planes = 3
    base_planes = 8
    layer_planes = (16, 32, 32, 64)
    strides = (1, 2, 1, 2)
    num_classes = 10

    root = jax.random.PRNGKey(0)
    k_params, k_x = jax.random.split(root)

    params = init_params(k_params, in_planes, base_planes, layer_planes,
                         strides, num_classes)
    x = jax.random.normal(k_x, (2, in_planes, 16, 16), jnp.float32)

    fwd = jax.jit(functools.partial(mobilenet_v1_forward, params))
    out = fwd(x)
    logits = jax.block_until_ready(out[KEY_OUTPUT])

    assert logits.shape == (2, num_classes)
    assert logits.dtype == jnp.float32
    assert bool(jnp.all(jnp.isfinite(logits)))
    print("KERNEL_OK")
</pallas_src>

<mosaic_0001>
module attributes {stable_mosaic.version = 11 : i64} {
  func.func @_matmul_bias_kernel(%arg0: i32, %arg1: i32, %arg2: i32, %arg3: memref<128x32xbf16, #tpu.memory_space<vmem>>, %arg4: memref<32x128xbf16, #tpu.memory_space<vmem>>, %arg5: memref<1x128xf32, #tpu.memory_space<vmem>>, %arg6: memref<128x128xbf16, #tpu.memory_space<vmem>>, %arg7: memref<128x128xf32, #tpu.memory_space<vmem>>) attributes {dimension_semantics = [#tpu.dimension_semantics<parallel>, #tpu.dimension_semantics<parallel>, #tpu.dimension_semantics<arbitrary>], iteration_bounds = array<i64: 1, 1, 1>, scalar_prefetch = 0 : i64, scratch_operands = 1 : i64, tpu.core_type = #tpu.core_type<tc>, window_params = [{transform_indices = @transform_0, window_bounds = array<i64: 128, 32>}, {transform_indices = @transform_1, window_bounds = array<i64: 32, 128>}, {transform_indices = @transform_2, window_bounds = array<i64: 1, 128>}, {transform_indices = @transform_3, window_bounds = array<i64: 128, 128>}]} {
    %c0_i32 = arith.constant 0 : i32
    %0 = arith.cmpi eq, %arg2, %c0_i32 : i32
    %1 = arith.extui %0 : i1 to i32
    %c0_i32_0 = arith.constant 0 : i32
    %2 = arith.cmpi ne, %1, %c0_i32_0 : i32
    scf.if %2 {
      %cst_10 = arith.constant 0.000000e+00 : f32
      %12 = vector.broadcast %cst_10 : f32 to vector<128x128xf32>
      %c0_11 = arith.constant 0 : index
      %c0_12 = arith.constant 0 : index
      %13 = vector.load %arg7[%c0_11, %c0_12] : memref<128x128xf32, #tpu.memory_space<vmem>>, vector<128x128xf32>
      tpu.vector_store %arg7[%c0_11, %c0_12], %12 {strides = array<i32>} : memref<128x128xf32, #tpu.memory_space<vmem>>, vector<128x128xf32>,
    } else {
    }
    %c0 = arith.constant 0 : index
    %c0_1 = arith.constant 0 : index
    %3 = vector.load %arg7[%c0, %c0_1] : memref<128x128xf32, #tpu.memory_space<vmem>>, vector<128x128xf32>
    %c0_2 = arith.constant 0 : index
    %c0_3 = arith.constant 0 : index
    %4 = vector.load %arg3[%c0_2, %c0_3] : memref<128x32xbf16, #tpu.memory_space<vmem>>, vector<128x32xbf16>
    %c0_4 = arith.constant 0 : index
    %c0_5 = arith.constant 0 : index
    %5 = vector.load %arg4[%c0_4, %c0_5] : memref<32x128xbf16, #tpu.memory_space<vmem>>, vector<32x128xbf16>
    %cst = arith.constant dense<0.000000e+00> : vector<128x128xf32>
    %6 = tpu.matmul %4, %5, %cst {dimension_numbers = #tpu.dot_dimension_numbers<[1], [0], [0], [1], [0, 0, 1, 1], [], []>} : vector<128x32xbf16>, vector<32x128xbf16>, vector<128x128xf32> -> vector<128x128xf32>
    %7 = arith.addf %3, %6 : vector<128x128xf32>
    %c0_6 = arith.constant 0 : index
    %c0_7 = arith.constant 0 : index
    %8 = vector.load %arg7[%c0_6, %c0_7] : memref<128x128xf32, #tpu.memory_space<vmem>>, vector<128x128xf32>
    tpu.vector_store %arg7[%c0_6, %c0_7], %7 {strides = array<i32>} : memref<128x128xf32, #tpu.memory_space<vmem>>, vector<128x128xf32>,
    %c0_i32_8 = arith.constant 0 : i32
    %9 = arith.cmpi eq, %arg2, %c0_i32_8 : i32
    %10 = arith.extui %9 : i1 to i32
    %c0_i32_9 = arith.constant 0 : i32
    %11 = arith.cmpi ne, %10, %c0_i32_9 : i32
    scf.if %11 {
      %c0_10 = arith.constant 0 : index
      %c0_11 = arith.constant 0 : index
      %12 = vector.load %arg7[%c0_10, %c0_11] : memref<128x128xf32, #tpu.memory_space<vmem>>, vector<128x128xf32>
      %c0_12 = arith.constant 0 : index
      %c0_13 = arith.constant 0 : index
      %13 = vector.load %arg5[%c0_12, %c0_13] : memref<1x128xf32, #tpu.memory_space<vmem>>, vector<1x128xf32>
      %14 = vector.broadcast %13 : vector<1x128xf32> to vector<128x128xf32>
      %15 = arith.addf %12, %14 : vector<128x128xf32>
      %cst_14 = arith.constant 0.000000e+00 : f32
      %16 = vector.broadcast %cst_14 : f32 to vector<128x128xf32>
      %17 = arith.maximumf %15, %16 : vector<128x128xf32>
      %18 = arith.truncf %17 : vector<128x128xf32> to vector<128x128xbf16>
      %c0_15 = arith.constant 0 : index
      %c0_16 = arith.constant 0 : index
      %19 = vector.load %arg6[%c0_15, %c0_16] : memref<128x128xbf16, #tpu.memory_space<vmem>>, vector<128x128xbf16>
      tpu.vector_store %arg6[%c0_15, %c0_16], %18 {strides = array<i32>} : memref<128x128xbf16, #tpu.memory_space<vmem>>, vector<128x128xbf16>,
    } else {
    }
    return
  }
  func.func @transform_0(%arg0: i32, %arg1: i32, %arg2: i32) -> (i32, i32) {
    %c0_i32 = arith.constant 0 : i32
    return %arg0, %arg2 : i32, i32
  }
  func.func @transform_1(%arg0: i32, %arg1: i32, %arg2: i32) -> (i32, i32) {
    %c0_i32 = arith.constant 0 : i32
    return %arg2, %arg1 : i32, i32
  }
  func.func @transform_2(%arg0: i32, %arg1: i32, %arg2: i32) -> (i32, i32) {
    %c0_i32 = arith.constant 0 : i32
    %c0_i32_0 = arith.constant 0 : i32
    return %c0_i32, %arg1 : i32, i32
  }
  func.func @transform_3(%arg0: i32, %arg1: i32, %arg2: i32) -> (i32, i32) {
    %c0_i32 = arith.constant 0 : i32
    return %arg0, %arg1 : i32, i32
  }
}

module attributes {stable_mosaic.version = 11 : i64} {
  func.func @_dw_pw_kernel(%arg0: i32, %arg1: memref<1x240x128xbf16, #tpu.memory_space<vmem>>, %arg2: memref<9x128xf32, #tpu.memory_space<vmem>>, %arg3: memref<1x128xf32, #tpu.memory_space<vmem>>, %arg4: memref<128x128xbf16, #tpu.memory_space<vmem>>, %arg5: memref<1x128xf32, #tpu.memory_space<vmem>>, %arg6: memref<1x64x128xbf16, #tpu.memory_space<vmem>>) attributes {dimension_semantics = [#tpu.dimension_semantics<parallel>], iteration_bounds = array<i64: 2>, scalar_prefetch = 0 : i64, scratch_operands = 0 : i64, tpu.core_type = #tpu.core_type<tc>, window_params = [{transform_indices = @transform_0, window_bounds = array<i64: 1, 240, 128>}, {pipeline_mode = #tpu.pipeline_mode<synchronous>, transform_indices = @transform_1, window_bounds = array<i64: 9, 128>}, {pipeline_mode = #tpu.pipeline_mode<synchronous>, transform_indices = @transform_2, window_bounds = array<i64: 1, 128>}, {pipeline_mode = #tpu.pipeline_mode<synchronous>, transform_indices = @transform_3, window_bounds = array<i64: 128, 128>}, {pipeline_mode = #tpu.pipeline_mode<synchronous>, transform_indices = @transform_4, window_bounds = array<i64: 1, 128>}, {transform_indices = @transform_5, window_bounds = array<i64: 1, 64, 128>}]} {
    %c0 = arith.constant 0 : index
    %c0_0 = arith.constant 0 : index
    %0 = vector.load %arg2[%c0, %c0_0] : memref<9x128xf32, #tpu.memory_space<vmem>>, vector<9x128xf32>
    %c0_1 = arith.constant 0 : index
    %c0_2 = arith.constant 0 : index
    %c0_3 = arith.constant 0 : index
    %1 = vector.load %arg1[%c0_1, %c0_2, %c0_3] : memref<1x240x128xbf16, #tpu.memory_space<vmem>>, vector<1x64x128xbf16>
    %2 = vector.shape_cast %1 : vector<1x64x128xbf16> to vector<64x128xbf16>
    %3 = arith.extf %2 : vector<64x128xbf16> to vector<64x128xf32>
    %4 = vector.extract_strided_slice %0 {offsets = [0, 0], sizes = [1, 128], strides = [1, 1]} : vector<9x128xf32> to vector<1x128xf32>
    %5 = vector.broadcast %4 : vector<1x128xf32> to vector<64x128xf32>
    %6 = arith.mulf %3, %5 : vector<64x128xf32>
    %c0_4 = arith.constant 0 : index
    %c80 = arith.constant 80 : index
    %c0_5 = arith.constant 0 : index
    %7 = vector.load %arg1[%c0_4, %c80, %c0_5] : memref<1x240x128xbf16, #tpu.memory_space<vmem>>, vector<1x64x128xbf16>
    %8 = vector.shape_cast %7 : vector<1x64x128xbf16> to vector<64x128xbf16>
    %9 = arith.extf %8 : vector<64x128xbf16> to vector<64x128xf32>
    %10 = vector.extract_strided_slice %0 {offsets = [1, 0], sizes = [1, 128], strides = [1, 1]} : vector<9x128xf32> to vector<1x128xf32>
    %11 = vector.broadcast %10 : vector<1x128xf32> to vector<64x128xf32>
    %12 = arith.mulf %9, %11 : vector<64x128xf32>
    %c0_6 = arith.constant 0 : index
    %c160 = arith.constant 160 : index
    %c0_7 = arith.constant 0 : index
    %13 = vector.load %arg1[%c0_6, %c160, %c0_7] : memref<1x240x128xbf16, #tpu.memory_space<vmem>>, vector<1x64x128xbf16>
    %14 = vector.shape_cast %13 : vector<1x64x128xbf16> to vector<64x128xbf16>
    %15 = arith.extf %14 : vector<64x128xbf16> to vector<64x128xf32>
    %16 = vector.extract_strided_slice %0 {offsets = [2, 0], sizes = [1, 128], strides = [1, 1]} : vector<9x128xf32> to vector<1x128xf32>
    %17 = vector.broadcast %16 : vector<1x128xf32> to vector<64x128xf32>
    %18 = arith.mulf %15, %17 : vector<64x128xf32>
    %c0_8 = arith.constant 0 : index
    %c8 = arith.constant 8 : index
    %c0_9 = arith.constant 0 : index
    %19 = vector.load %arg1[%c0_8, %c8, %c0_9] : memref<1x240x128xbf16, #tpu.memory_space<vmem>>, vector<1x64x128xbf16>
    %20 = vector.shape_cast %19 : vector<1x64x128xbf16> to vector<64x128xbf16>
    %21 = arith.extf %20 : vector<64x128xbf16> to vector<64x128xf32>
    %22 = vector.extract_strided_slice %0 {offsets = [3, 0], sizes = [1, 128], strides = [1, 1]} : vector<9x128xf32> to vector<1x128xf32>
    %23 = vector.broadcast %22 : vector<1x128xf32> to vector<64x128xf32>
    %24 = arith.mulf %21, %23 : vector<64x128xf32>
    %c0_10 = arith.constant 0 : index
    %c88 = arith.constant 88 : index
    %c0_11 = arith.constant 0 : index
    %25 = vector.load %arg1[%c0_10, %c88, %c0_11] : memref<1x240x128xbf16, #tpu.memory_space<vmem>>, vector<1x64x128xbf16>
    %26 = vector.shape_cast %25 : vector<1x64x128xbf16> to vector<64x128xbf16>
    %27 = arith.extf %26 : vector<64x128xbf16> to vector<64x128xf32>
    %28 = vector.extract_strided_slice %0 {offsets = [4, 0], sizes = [1, 128], strides = [1, 1]} : vector<9x128xf32> to vector<1x128xf32>
    %29 = vector.broadcast %28 : vector<1x128xf32> to vector<64x128xf32>
    %30 = arith.mulf %27, %29 : vector<64x128xf32>
    %c0_12 = arith.constant 0 : index
    %c168 = arith.constant 168 : index
    %c0_13 = arith.constant 0 : index
    %31 = vector.load %arg1[%c0_12, %c168, %c0_13] : memref<1x240x128xbf16, #tpu.memory_space<vmem>>, vector<1x64x128xbf16>
    %32 = vector.shape_cast %31 : vector<1x64x128xbf16> to vector<64x128xbf16>
    %33 = arith.extf %32 : vector<64x128xbf16> to vector<64x128xf32>
    %34 = vector.extract_strided_slice %0 {offsets = [5, 0], sizes = [1, 128], strides = [1, 1]} : vector<9x128xf32> to vector<1x128xf32>
    %35 = vector.broadcast %34 : vector<1x128xf32> to vector<64x128xf32>
    %36 = arith.mulf %33, %35 : vector<64x128xf32>
    %c0_14 = arith.constant 0 : index
    %c16 = arith.constant 16 : index
    %c0_15 = arith.constant 0 : index
    %37 = vector.load %arg1[%c0_14, %c16, %c0_15] : memref<1x240x128xbf16, #tpu.memory_space<vmem>>, vector<1x64x128xbf16>
    %38 = vector.shape_cast %37 : vector<1x64x128xbf16> to vector<64x128xbf16>
    %39 = arith.extf %38 : vector<64x128xbf16> to vector<64x128xf32>
    %40 = vector.extract_strided_slice %0 {offsets = [6, 0], sizes = [1, 128], strides = [1, 1]} : vector<9x128xf32> to vector<1x128xf32>
    %41 = vector.broadcast %40 : vector<1x128xf32> to vector<64x128xf32>
    %42 = arith.mulf %39, %41 : vector<64x128xf32>
    %c0_16 = arith.constant 0 : index
    %c96 = arith.constant 96 : index
    %c0_17 = arith.constant 0 : index
    %43 = vector.load %arg1[%c0_16, %c96, %c0_17] : memref<1x240x128xbf16, #tpu.memory_space<vmem>>, vector<1x64x128xbf16>
    %44 = vector.shape_cast %43 : vector<1x64x128xbf16> to vector<64x128xbf16>
    %45 = arith.extf %44 : vector<64x128xbf16> to vector<64x128xf32>
    %46 = vector.extract_strided_slice %0 {offsets = [7, 0], sizes = [1, 128], strides = [1, 1]} : vector<9x128xf32> to vector<1x128xf32>
    %47 = vector.broadcast %46 : vector<1x128xf32> to vector<64x128xf32>
    %48 = arith.mulf %45, %47 : vector<64x128xf32>
    %c0_18 = arith.constant 0 : index
    %c176 = arith.constant 176 : index
    %c0_19 = arith.constant 0 : index
    %49 = vector.load %arg1[%c0_18, %c176, %c0_19] : memref<1x240x128xbf16, #tpu.memory_space<vmem>>, vector<1x64x128xbf16>
    %50 = vector.shape_cast %49 : vector<1x64x128xbf16> to vector<64x128xbf16>
    %51 = arith.extf %50 : vector<64x128xbf16> to vector<64x128xf32>
    %52 = vector.extract_strided_slice %0 {offsets = [8, 0], sizes = [1, 128], strides = [1, 1]} : vector<9x128xf32> to vector<1x128xf32>
    %53 = vector.broadcast %52 : vector<1x128xf32> to vector<64x128xf32>
    %54 = arith.mulf %51, %53 : vector<64x128xf32>
    %55 = arith.addf %6, %12 : vector<64x128xf32>
    %56 = arith.addf %18, %24 : vector<64x128xf32>
    %57 = arith.addf %30, %36 : vector<64x128xf32>
    %58 = arith.addf %42, %48 : vector<64x128xf32>
    %59 = arith.addf %55, %56 : vector<64x128xf32>
    %60 = arith.addf %57, %58 : vector<64x128xf32>
    %61 = arith.addf %59, %60 : vector<64x128xf32>
    %62 = arith.addf %61, %54 : vector<64x128xf32>
    %c0_20 = arith.constant 0 : index
    %c0_21 = arith.constant 0 : index
    %63 = vector.load %arg3[%c0_20, %c0_21] : memref<1x128xf32, #tpu.memory_space<vmem>>, vector<1x128xf32>
    %64 = vector.broadcast %63 : vector<1x128xf32> to vector<64x128xf32>
    %65 = arith.addf %62, %64 : vector<64x128xf32>
    %cst = arith.constant 0.000000e+00 : f32
    %66 = vector.broadcast %cst : f32 to vector<64x128xf32>
    %67 = arith.maximumf %65, %66 : vector<64x128xf32>
    %68 = arith.truncf %67 : vector<64x128xf32> to vector<64x128xbf16>
    %c0_22 = arith.constant 0 : index
    %c0_23 = arith.constant 0 : index
    %69 = vector.load %arg4[%c0_22, %c0_23] : memref<128x128xbf16, #tpu.memory_space<vmem>>, vector<128x128xbf16>
    %cst_24 = arith.constant dense<0.000000e+00> : vector<64x128xf32>
    %70 = tpu.matmul %68, %69, %cst_24 {dimension_numbers = #tpu.dot_dimension_numbers<[1], [0], [0], [1], [0, 0, 1, 1], [], []>} : vector<64x128xbf16>, vector<128x128xbf16>, vector<64x128xf32> -> vector<64x128xf32>
    %c0_25 = arith.constant 0 : index
    %c0_26 = arith.constant 0 : index
    %71 = vector.load %arg5[%c0_25, %c0_26] : memref<1x128xf32, #tpu.memory_space<vmem>>, vector<1x128xf32>
    %72 = vector.broadcast %71 : vector<1x128xf32> to vector<64x128xf32>
    %73 = arith.addf %70, %72 : vector<64x128xf32>
    %cst_27 = arith.constant 0.000000e+00 : f32
    %74 = vector.broadcast %cst_27 : f32 to vector<64x128xf32>
    %75 = arith.maximumf %73, %74 : vector<64x128xf32>
    %76 = arith.truncf %75 : vector<64x128xf32> to vector<64x128xbf16>
    %c0_28 = arith.constant 0 : index
    %c0_29 = arith.constant 0 : index
    %c0_30 = arith.constant 0 : index
    %77 = vector.load %arg6[%c0_28, %c0_29, %c0_30] : memref<1x64x128xbf16, #tpu.memory_space<vmem>>, vector<1x64x128xbf16>
    %78 = vector.shape_cast %77 : vector<1x64x128xbf16> to vector<64x128xbf16>
    %79 = vector.shape_cast %76 : vector<64x128xbf16> to vector<1x64x128xbf16>
    tpu.vector_store %arg6[%c0_28, %c0_29, %c0_30], %79 {strides = array<i32>} : memref<1x64x128xbf16, #tpu.memory_space<vmem>>, vector<1x64x128xbf16>,
    return
  }
  func.func @transform_0(%arg0: i32) -> (i32, i32, i32) {
    %c0_i32 = arith.constant 0 : i32
    %c0_i32_0 = arith.constant 0 : i32
    %c0_i32_1 = arith.constant 0 : i32
    return %arg0, %c0_i32, %c0_i32_0 : i32, i32, i32
  }
  func.func @transform_1(%arg0: i32) -> (i32, i32) {
    %c0_i32 = arith.constant 0 : i32
    %c0_i32_0 = arith.constant 0 : i32
    %c0_i32_1 = arith.constant 0 : i32
    return %c0_i32, %c0_i32_0 : i32, i32
  }
  func.func @transform_2(%arg0: i32) -> (i32, i32) {
    %c0_i32 = arith.constant 0 : i32
    %c0_i32_0 = arith.constant 0 : i32
    %c0_i32_1 = arith.constant 0 : i32
    return %c0_i32, %c0_i32_0 : i32, i32
  }
  func.func @transform_3(%arg0: i32) -> (i32, i32) {
    %c0_i32 = arith.constant 0 : i32
    %c0_i32_0 = arith.constant 0 : i32
    %c0_i32_1 = arith.constant 0 : i32
    return %c0_i32, %c0_i32_0 : i32, i32
  }
  func.func @transform_4(%arg0: i32) -> (i32, i32) {
    %c0_i32 = arith.constant 0 : i32
    %c0_i32_0 = arith.constant 0 : i32
    %c0_i32_1 = arith.constant 0 : i32
    return %c0_i32, %c0_i32_0 : i32, i32
  }
  func.func @transform_5(%arg0: i32) -> (i32, i32, i32) {
    %c0_i32 = arith.constant 0 : i32
    %c0_i32_0 = arith.constant 0 : i32
    %c0_i32_1 = arith.constant 0 : i32
    return %arg0, %c0_i32, %c0_i32_0 : i32, i32, i32
  }
}

module attributes {stable_mosaic.version = 11 : i64} {
  func.func @_dw_pw_kernel(%arg0: i32, %arg1: memref<1x108x128xbf16, #tpu.memory_space<vmem>>, %arg2: memref<9x128xf32, #tpu.memory_space<vmem>>, %arg3: memref<1x128xf32, #tpu.memory_space<vmem>>, %arg4: memref<128x128xbf16, #tpu.memory_space<vmem>>, %arg5: memref<1x128xf32, #tpu.memory_space<vmem>>, %arg6: memref<1x16x128xbf16, #tpu.memory_space<vmem>>) attributes {dimension_semantics = [#tpu.dimension_semantics<parallel>], iteration_bounds = array<i64: 2>, scalar_prefetch = 0 : i64, scratch_operands = 0 : i64, tpu.core_type = #tpu.core_type<tc>, window_params = [{transform_indices = @transform_0, window_bounds = array<i64: 1, 108, 128>}, {pipeline_mode = #tpu.pipeline_mode<synchronous>, transform_indices = @transform_1, window_bounds = array<i64: 9, 128>}, {pipeline_mode = #tpu.pipeline_mode<synchronous>, transform_indices = @transform_2, window_bounds = array<i64: 1, 128>}, {pipeline_mode = #tpu.pipeline_mode<synchronous>, transform_indices = @transform_3, window_bounds = array<i64: 128, 128>}, {pipeline_mode = #tpu.pipeline_mode<synchronous>, transform_indices = @transform_4, window_bounds = array<i64: 1, 128>}, {transform_indices = @transform_5, window_bounds = array<i64: 1, 16, 128>}]} {
    %c0 = arith.constant 0 : index
    %c0_0 = arith.constant 0 : index
    %0 = vector.load %arg2[%c0, %c0_0] : memref<9x128xf32, #tpu.memory_space<vmem>>, vector<9x128xf32>
    %c0_1 = arith.constant 0 : index
    %c0_2 = arith.constant 0 : index
    %c0_3 = arith.constant 0 : index
    %1 = vector.load %arg1[%c0_1, %c0_2, %c0_3] : memref<1x108x128xbf16, #tpu.memory_space<vmem>>, vector<1x16x128xbf16>
    %2 = vector.shape_cast %1 : vector<1x16x128xbf16> to vector<16x128xbf16>
    %3 = arith.extf %2 : vector<16x128xbf16> to vector<16x128xf32>
    %4 = vector.extract_strided_slice %0 {offsets = [0, 0], sizes = [1, 128], strides = [1, 1]} : vector<9x128xf32> to vector<1x128xf32>
    %5 = vector.broadcast %4 : vector<1x128xf32> to vector<16x128xf32>
    %6 = arith.mulf %3, %5 : vector<16x128xf32>
    %c0_4 = arith.constant 0 : index
    %c20 = arith.constant 20 : index
    %c0_5 = arith.constant 0 : index
    %7 = vector.load %arg1[%c0_4, %c20, %c0_5] : memref<1x108x128xbf16, #tpu.memory_space<vmem>>, vector<1x16x128xbf16>
    %8 = vector.shape_cast %7 : vector<1x16x128xbf16> to vector<16x128xbf16>
    %9 = arith.extf %8 : vector<16x128xbf16> to vector<16x128xf32>
    %10 = vector.extract_strided_slice %0 {offsets = [1, 0], sizes = [1, 128], strides = [1, 1]} : vector<9x128xf32> to vector<1x128xf32>
    %11 = vector.broadcast %10 : vector<1x128xf32> to vector<16x128xf32>
    %12 = arith.mulf %9, %11 : vector<16x128xf32>
    %c0_6 = arith.constant 0 : index
    %c40 = arith.constant 40 : index
    %c0_7 = arith.constant 0 : index
    %13 = vector.load %arg1[%c0_6, %c40, %c0_7] : memref<1x108x128xbf16, #tpu.memory_space<vmem>>, vector<1x16x128xbf16>
    %14 = vector.shape_cast %13 : vector<1x16x128xbf16> to vector<16x128xbf16>
    %15 = arith.extf %14 : vector<16x128xbf16> to vector<16x128xf32>
    %16 = vector.extract_strided_slice %0 {offsets = [2, 0], sizes = [1, 128], strides = [1, 1]} : vector<9x128xf32> to vector<1x128xf32>
    %17 = vector.broadcast %16 : vector<1x128xf32> to vector<16x128xf32>
    %18 = arith.mulf %15, %17 : vector<16x128xf32>
    %c0_8 = arith.constant 0 : index
    %c60 = arith.constant 60 : index
    %c0_9 = arith.constant 0 : index
    %19 = vector.load %arg1[%c0_8, %c60, %c0_9] : memref<1x108x128xbf16, #tpu.memory_space<vmem>>, vector<1x16x128xbf16>
    %20 = vector.shape_cast %19 : vector<1x16x128xbf16> to vector<16x128xbf16>
    %21 = arith.extf %20 : vector<16x128xbf16> to vector<16x128xf32>
    %22 = vector.extract_strided_slice %0 {offsets = [3, 0], sizes = [1, 128], strides = [1, 1]} : vector<9x128xf32> to vector<1x128xf32>
    %23 = vector.broadcast %22 : vector<1x128xf32> to vector<16x128xf32>
    %24 = arith.mulf %21, %23 : vector<16x128xf32>
    %c0_10 = arith.constant 0 : index
    %c76 = arith.constant 76 : index
    %c0_11 = arith.constant 0 : index
    %25 = vector.load %arg1[%c0_10, %c76, %c0_11] : memref<1x108x128xbf16, #tpu.memory_space<vmem>>, vector<1x16x128xbf16>
    %26 = vector.shape_cast %25 : vector<1x16x128xbf16> to vector<16x128xbf16>
    %27 = arith.extf %26 : vector<16x128xbf16> to vector<16x128xf32>
    %28 = vector.extract_strided_slice %0 {offsets = [4, 0], sizes = [1, 128], strides = [1, 1]} : vector<9x128xf32> to vector<1x128xf32>
    %29 = vector.broadcast %28 : vector<1x128xf32> to vector<16x128xf32>
    %30 = arith.mulf %27, %29 : vector<16x128xf32>
    %c0_12 = arith.constant 0 : index
    %c92 = arith.constant 92 : index
    %c0_13 = arith.constant 0 : index
    %31 = vector.load %arg1[%c0_12, %c92, %c0_13] : memref<1x108x128xbf16, #tpu.memory_space<vmem>>, vector<1x16x128xbf16>
    %32 = vector.shape_cast %31 : vector<1x16x128xbf16> to vector<16x128xbf16>
    %33 = arith.extf %32 : vector<16x128xbf16> to vector<16x128xf32>
    %34 = vector.extract_strided_slice %0 {offsets = [5, 0], sizes = [1, 128], strides = [1, 1]} : vector<9x128xf32> to vector<1x128xf32>
    %35 = vector.broadcast %34 : vector<1x128xf32> to vector<16x128xf32>
    %36 = arith.mulf %33, %35 : vector<16x128xf32>
    %c0_14 = arith.constant 0 : index
    %c4 = arith.constant 4 : index
    %c0_15 = arith.constant 0 : index
    %37 = vector.load %arg1[%c0_14, %c4, %c0_15] : memref<1x108x128xbf16, #tpu.memory_space<vmem>>, vector<1x16x128xbf16>
    %38 = vector.shape_cast %37 : vector<1x16x128xbf16> to vector<16x128xbf16>
    %39 = arith.extf %38 : vector<16x128xbf16> to vector<16x128xf32>
    %40 = vector.extract_strided_slice %0 {offsets = [6, 0], sizes = [1, 128], strides = [1, 1]} : vector<9x128xf32> to vector<1x128xf32>
    %41 = vector.broadcast %40 : vector<1x128xf32> to vector<16x128xf32>
    %42 = arith.mulf %39, %41 : vector<16x128xf32>
    %c0_16 = arith.constant 0 : index
    %c24 = arith.constant 24 : index
    %c0_17 = arith.constant 0 : index
    %43 = vector.load %arg1[%c0_16, %c24, %c0_17] : memref<1x108x128xbf16, #tpu.memory_space<vmem>>, vector<1x16x128xbf16>
    %44 = vector.shape_cast %43 : vector<1x16x128xbf16> to vector<16x128xbf16>
    %45 = arith.extf %44 : vector<16x128xbf16> to vector<16x128xf32>
    %46 = vector.extract_strided_slice %0 {offsets = [7, 0], sizes = [1, 128], strides = [1, 1]} : vector<9x128xf32> to vector<1x128xf32>
    %47 = vector.broadcast %46 : vector<1x128xf32> to vector<16x128xf32>
    %48 = arith.mulf %45, %47 : vector<16x128xf32>
    %c0_18 = arith.constant 0 : index
    %c44 = arith.constant 44 : index
    %c0_19 = arith.constant 0 : index
    %49 = vector.load %arg1[%c0_18, %c44, %c0_19] : memref<1x108x128xbf16, #tpu.memory_space<vmem>>, vector<1x16x128xbf16>
    %50 = vector.shape_cast %49 : vector<1x16x128xbf16> to vector<16x128xbf16>
    %51 = arith.extf %50 : vector<16x128xbf16> to vector<16x128xf32>
    %52 = vector.extract_strided_slice %0 {offsets = [8, 0], sizes = [1, 128], strides = [1, 1]} : vector<9x128xf32> to vector<1x128xf32>
    %53 = vector.broadcast %52 : vector<1x128xf32> to vector<16x128xf32>
    %54 = arith.mulf %51, %53 : vector<16x128xf32>
    %55 = arith.addf %6, %12 : vector<16x128xf32>
    %56 = arith.addf %18, %24 : vector<16x128xf32>
    %57 = arith.addf %30, %36 : vector<16x128xf32>
    %58 = arith.addf %42, %48 : vector<16x128xf32>
    %59 = arith.addf %55, %56 : vector<16x128xf32>
    %60 = arith.addf %57, %58 : vector<16x128xf32>
    %61 = arith.addf %59, %60 : vector<16x128xf32>
    %62 = arith.addf %61, %54 : vector<16x128xf32>
    %c0_20 = arith.constant 0 : index
    %c0_21 = arith.constant 0 : index
    %63 = vector.load %arg3[%c0_20, %c0_21] : memref<1x128xf32, #tpu.memory_space<vmem>>, vector<1x128xf32>
    %64 = vector.broadcast %63 : vector<1x128xf32> to vector<16x128xf32>
    %65 = arith.addf %62, %64 : vector<16x128xf32>
    %cst = arith.constant 0.000000e+00 : f32
    %66 = vector.broadcast %cst : f32 to vector<16x128xf32>
    %67 = arith.maximumf %65, %66 : vector<16x128xf32>
    %68 = arith.truncf %67 : vector<16x128xf32> to vector<16x128xbf16>
    %c0_22 = arith.constant 0 : index
    %c0_23 = arith.constant 0 : index
    %69 = vector.load %arg4[%c0_22, %c0_23] : memref<128x128xbf16, #tpu.memory_space<vmem>>, vector<128x128xbf16>
    %cst_24 = arith.constant dense<0.000000e+00> : vector<16x128xf32>
    %70 = tpu.matmul %68, %69, %cst_24 {dimension_numbers = #tpu.dot_dimension_numbers<[1], [0], [0], [1], [0, 0, 1, 1], [], []>} : vector<16x128xbf16>, vector<128x128xbf16>, vector<16x128xf32> -> vector<16x128xf32>
    %c0_25 = arith.constant 0 : index
    %c0_26 = arith.constant 0 : index
    %71 = vector.load %arg5[%c0_25, %c0_26] : memref<1x128xf32, #tpu.memory_space<vmem>>, vector<1x128xf32>
    %72 = vector.broadcast %71 : vector<1x128xf32> to vector<16x128xf32>
    %73 = arith.addf %70, %72 : vector<16x128xf32>
    %cst_27 = arith.constant 0.000000e+00 : f32
    %74 = vector.broadcast %cst_27 : f32 to vector<16x128xf32>
    %75 = arith.maximumf %73, %74 : vector<16x128xf32>
    %76 = arith.truncf %75 : vector<16x128xf32> to vector<16x128xbf16>
    %c0_28 = arith.constant 0 : index
    %c0_29 = arith.constant 0 : index
    %c0_30 = arith.constant 0 : index
    %77 = vector.load %arg6[%c0_28, %c0_29, %c0_30] : memref<1x16x128xbf16, #tpu.memory_space<vmem>>, vector<1x16x128xbf16>
    %78 = vector.shape_cast %77 : vector<1x16x128xbf16> to vector<16x128xbf16>
    %79 = vector.shape_cast %76 : vector<16x128xbf16> to vector<1x16x128xbf16>
    tpu.vector_store %arg6[%c0_28, %c0_29, %c0_30], %79 {strides = array<i32>} : memref<1x16x128xbf16, #tpu.memory_space<vmem>>, vector<1x16x128xbf16>,
    return
  }
  func.func @transform_0(%arg0: i32) -> (i32, i32, i32) {
    %c0_i32 = arith.constant 0 : i32
    %c0_i32_0 = arith.constant 0 : i32
    %c0_i32_1 = arith.constant 0 : i32
    return %arg0, %c0_i32, %c0_i32_0 : i32, i32, i32
  }
  func.func @transform_1(%arg0: i32) -> (i32, i32) {
    %c0_i32 = arith.constant 0 : i32
    %c0_i32_0 = arith.constant 0 : i32
    %c0_i32_1 = arith.constant 0 : i32
    return %c0_i32, %c0_i32_0 : i32, i32
  }
  func.func @transform_2(%arg0: i32) -> (i32, i32) {
    %c0_i32 = arith.constant 0 : i32
    %c0_i32_0 = arith.constant 0 : i32
    %c0_i32_1 = arith.constant 0 : i32
    return %c0_i32, %c0_i32_0 : i32, i32
  }
  func.func @transform_3(%arg0: i32) -> (i32, i32) {
    %c0_i32 = arith.constant 0 : i32
    %c0_i32_0 = arith.constant 0 : i32
    %c0_i32_1 = arith.constant 0 : i32
    return %c0_i32, %c0_i32_0 : i32, i32
  }
  func.func @transform_4(%arg0: i32) -> (i32, i32) {
    %c0_i32 = arith.constant 0 : i32
    %c0_i32_0 = arith.constant 0 : i32
    %c0_i32_1 = arith.constant 0 : i32
    return %c0_i32, %c0_i32_0 : i32, i32
  }
  func.func @transform_5(%arg0: i32) -> (i32, i32, i32) {
    %c0_i32 = arith.constant 0 : i32
    %c0_i32_0 = arith.constant 0 : i32
    %c0_i32_1 = arith.constant 0 : i32
    return %arg0, %c0_i32, %c0_i32_0 : i32, i32, i32
  }
}

module attributes {stable_mosaic.version = 11 : i64} {
  func.func @_dw_pw_kernel(%arg0: i32, %arg1: memref<1x72x128xbf16, #tpu.memory_space<vmem>>, %arg2: memref<9x128xf32, #tpu.memory_space<vmem>>, %arg3: memref<1x128xf32, #tpu.memory_space<vmem>>, %arg4: memref<128x128xbf16, #tpu.memory_space<vmem>>, %arg5: memref<1x128xf32, #tpu.memory_space<vmem>>, %arg6: memref<1x16x128xbf16, #tpu.memory_space<vmem>>) attributes {dimension_semantics = [#tpu.dimension_semantics<parallel>], iteration_bounds = array<i64: 2>, scalar_prefetch = 0 : i64, scratch_operands = 0 : i64, tpu.core_type = #tpu.core_type<tc>, window_params = [{transform_indices = @transform_0, window_bounds = array<i64: 1, 72, 128>}, {pipeline_mode = #tpu.pipeline_mode<synchronous>, transform_indices = @transform_1, window_bounds = array<i64: 9, 128>}, {pipeline_mode = #tpu.pipeline_mode<synchronous>, transform_indices = @transform_2, window_bounds = array<i64: 1, 128>}, {pipeline_mode = #tpu.pipeline_mode<synchronous>, transform_indices = @transform_3, window_bounds = array<i64: 128, 128>}, {pipeline_mode = #tpu.pipeline_mode<synchronous>, transform_indices = @transform_4, window_bounds = array<i64: 1, 128>}, {transform_indices = @transform_5, window_bounds = array<i64: 1, 16, 128>}]} {
    %c0 = arith.constant 0 : index
    %c0_0 = arith.constant 0 : index
    %0 = vector.load %arg2[%c0, %c0_0] : memref<9x128xf32, #tpu.memory_space<vmem>>, vector<9x128xf32>
    %c0_1 = arith.constant 0 : index
    %c0_2 = arith.constant 0 : index
    %c0_3 = arith.constant 0 : index
    %1 = vector.load %arg1[%c0_1, %c0_2, %c0_3] : memref<1x72x128xbf16, #tpu.memory_space<vmem>>, vector<1x16x128xbf16>
    %2 = vector.shape_cast %1 : vector<1x16x128xbf16> to vector<16x128xbf16>
    %3 = arith.extf %2 : vector<16x128xbf16> to vector<16x128xf32>
    %4 = vector.extract_strided_slice %0 {offsets = [0, 0], sizes = [1, 128], strides = [1, 1]} : vector<9x128xf32> to vector<1x128xf32>
    %5 = vector.broadcast %4 : vector<1x128xf32> to vector<16x128xf32>
    %6 = arith.mulf %3, %5 : vector<16x128xf32>
    %c0_4 = arith.constant 0 : index
    %c24 = arith.constant 24 : index
    %c0_5 = arith.constant 0 : index
    %7 = vector.load %arg1[%c0_4, %c24, %c0_5] : memref<1x72x128xbf16, #tpu.memory_space<vmem>>, vector<1x16x128xbf16>
    %8 = vector.shape_cast %7 : vector<1x16x128xbf16> to vector<16x128xbf16>
    %9 = arith.extf %8 : vector<16x128xbf16> to vector<16x128xf32>
    %10 = vector.extract_strided_slice %0 {offsets = [1, 0], sizes = [1, 128], strides = [1, 1]} : vector<9x128xf32> to vector<1x128xf32>
    %11 = vector.broadcast %10 : vector<1x128xf32> to vector<16x128xf32>
    %12 = arith.mulf %9, %11 : vector<16x128xf32>
    %c0_6 = arith.constant 0 : index
    %c48 = arith.constant 48 : index
    %c0_7 = arith.constant 0 : index
    %13 = vector.load %arg1[%c0_6, %c48, %c0_7] : memref<1x72x128xbf16, #tpu.memory_space<vmem>>, vector<1x16x128xbf16>
    %14 = vector.shape_cast %13 : vector<1x16x128xbf16> to vector<16x128xbf16>
    %15 = arith.extf %14 : vector<16x128xbf16> to vector<16x128xf32>
    %16 = vector.extract_strided_slice %0 {offsets = [2, 0], sizes = [1, 128], strides = [1, 1]} : vector<9x128xf32> to vector<1x128xf32>
    %17 = vector.broadcast %16 : vector<1x128xf32> to vector<16x128xf32>
    %18 = arith.mulf %15, %17 : vector<16x128xf32>
    %c0_8 = arith.constant 0 : index
    %c4 = arith.constant 4 : index
    %c0_9 = arith.constant 0 : index
    %19 = vector.load %arg1[%c0_8, %c4, %c0_9] : memref<1x72x128xbf16, #tpu.memory_space<vmem>>, vector<1x16x128xbf16>
    %20 = vector.shape_cast %19 : vector<1x16x128xbf16> to vector<16x128xbf16>
    %21 = arith.extf %20 : vector<16x128xbf16> to vector<16x128xf32>
    %22 = vector.extract_strided_slice %0 {offsets = [3, 0], sizes = [1, 128], strides = [1, 1]} : vector<9x128xf32> to vector<1x128xf32>
    %23 = vector.broadcast %22 : vector<1x128xf32> to vector<16x128xf32>
    %24 = arith.mulf %21, %23 : vector<16x128xf32>
    %c0_10 = arith.constant 0 : index
    %c28 = arith.constant 28 : index
    %c0_11 = arith.constant 0 : index
    %25 = vector.load %arg1[%c0_10, %c28, %c0_11] : memref<1x72x128xbf16, #tpu.memory_space<vmem>>, vector<1x16x128xbf16>
    %26 = vector.shape_cast %25 : vector<1x16x128xbf16> to vector<16x128xbf16>
    %27 = arith.extf %26 : vector<16x128xbf16> to vector<16x128xf32>
    %28 = vector.extract_strided_slice %0 {offsets = [4, 0], sizes = [1, 128], strides = [1, 1]} : vector<9x128xf32> to vector<1x128xf32>
    %29 = vector.broadcast %28 : vector<1x128xf32> to vector<16x128xf32>
    %30 = arith.mulf %27, %29 : vector<16x128xf32>
    %c0_12 = arith.constant 0 : index
    %c52 = arith.constant 52 : index
    %c0_13 = arith.constant 0 : index
    %31 = vector.load %arg1[%c0_12, %c52, %c0_13] : memref<1x72x128xbf16, #tpu.memory_space<vmem>>, vector<1x16x128xbf16>
    %32 = vector.shape_cast %31 : vector<1x16x128xbf16> to vector<16x128xbf16>
    %33 = arith.extf %32 : vector<16x128xbf16> to vector<16x128xf32>
    %34 = vector.extract_strided_slice %0 {offsets = [5, 0], sizes = [1, 128], strides = [1, 1]} : vector<9x128xf32> to vector<1x128xf32>
    %35 = vector.broadcast %34 : vector<1x128xf32> to vector<16x128xf32>
    %36 = arith.mulf %33, %35 : vector<16x128xf32>
    %c0_14 = arith.constant 0 : index
    %c8 = arith.constant 8 : index
    %c0_15 = arith.constant 0 : index
    %37 = vector.load %arg1[%c0_14, %c8, %c0_15] : memref<1x72x128xbf16, #tpu.memory_space<vmem>>, vector<1x16x128xbf16>
    %38 = vector.shape_cast %37 : vector<1x16x128xbf16> to vector<16x128xbf16>
    %39 = arith.extf %38 : vector<16x128xbf16> to vector<16x128xf32>
    %40 = vector.extract_strided_slice %0 {offsets = [6, 0], sizes = [1, 128], strides = [1, 1]} : vector<9x128xf32> to vector<1x128xf32>
    %41 = vector.broadcast %40 : vector<1x128xf32> to vector<16x128xf32>
    %42 = arith.mulf %39, %41 : vector<16x128xf32>
    %c0_16 = arith.constant 0 : index
    %c32 = arith.constant 32 : index
    %c0_17 = arith.constant 0 : index
    %43 = vector.load %arg1[%c0_16, %c32, %c0_17] : memref<1x72x128xbf16, #tpu.memory_space<vmem>>, vector<1x16x128xbf16>
    %44 = vector.shape_cast %43 : vector<1x16x128xbf16> to vector<16x128xbf16>
    %45 = arith.extf %44 : vector<16x128xbf16> to vector<16x128xf32>
    %46 = vector.extract_strided_slice %0 {offsets = [7, 0], sizes = [1, 128], strides = [1, 1]} : vector<9x128xf32> to vector<1x128xf32>
    %47 = vector.broadcast %46 : vector<1x128xf32> to vector<16x128xf32>
    %48 = arith.mulf %45, %47 : vector<16x128xf32>
    %c0_18 = arith.constant 0 : index
    %c56 = arith.constant 56 : index
    %c0_19 = arith.constant 0 : index
    %49 = vector.load %arg1[%c0_18, %c56, %c0_19] : memref<1x72x128xbf16, #tpu.memory_space<vmem>>, vector<1x16x128xbf16>
    %50 = vector.shape_cast %49 : vector<1x16x128xbf16> to vector<16x128xbf16>
    %51 = arith.extf %50 : vector<16x128xbf16> to vector<16x128xf32>
    %52 = vector.extract_strided_slice %0 {offsets = [8, 0], sizes = [1, 128], strides = [1, 1]} : vector<9x128xf32> to vector<1x128xf32>
    %53 = vector.broadcast %52 : vector<1x128xf32> to vector<16x128xf32>
    %54 = arith.mulf %51, %53 : vector<16x128xf32>
    %55 = arith.addf %6, %12 : vector<16x128xf32>
    %56 = arith.addf %18, %24 : vector<16x128xf32>
    %57 = arith.addf %30, %36 : vector<16x128xf32>
    %58 = arith.addf %42, %48 : vector<16x128xf32>
    %59 = arith.addf %55, %56 : vector<16x128xf32>
    %60 = arith.addf %57, %58 : vector<16x128xf32>
    %61 = arith.addf %59, %60 : vector<16x128xf32>
    %62 = arith.addf %61, %54 : vector<16x128xf32>
    %c0_20 = arith.constant 0 : index
    %c0_21 = arith.constant 0 : index
    %63 = vector.load %arg3[%c0_20, %c0_21] : memref<1x128xf32, #tpu.memory_space<vmem>>, vector<1x128xf32>
    %64 = vector.broadcast %63 : vector<1x128xf32> to vector<16x128xf32>
    %65 = arith.addf %62, %64 : vector<16x128xf32>
    %cst = arith.constant 0.000000e+00 : f32
    %66 = vector.broadcast %cst : f32 to vector<16x128xf32>
    %67 = arith.maximumf %65, %66 : vector<16x128xf32>
    %68 = arith.truncf %67 : vector<16x128xf32> to vector<16x128xbf16>
    %c0_22 = arith.constant 0 : index
    %c0_23 = arith.constant 0 : index
    %69 = vector.load %arg4[%c0_22, %c0_23] : memref<128x128xbf16, #tpu.memory_space<vmem>>, vector<128x128xbf16>
    %cst_24 = arith.constant dense<0.000000e+00> : vector<16x128xf32>
    %70 = tpu.matmul %68, %69, %cst_24 {dimension_numbers = #tpu.dot_dimension_numbers<[1], [0], [0], [1], [0, 0, 1, 1], [], []>} : vector<16x128xbf16>, vector<128x128xbf16>, vector<16x128xf32> -> vector<16x128xf32>
    %c0_25 = arith.constant 0 : index
    %c0_26 = arith.constant 0 : index
    %71 = vector.load %arg5[%c0_25, %c0_26] : memref<1x128xf32, #tpu.memory_space<vmem>>, vector<1x128xf32>
    %72 = vector.broadcast %71 : vector<1x128xf32> to vector<16x128xf32>
    %73 = arith.addf %70, %72 : vector<16x128xf32>
    %cst_27 = arith.constant 0.000000e+00 : f32
    %74 = vector.broadcast %cst_27 : f32 to vector<16x128xf32>
    %75 = arith.maximumf %73, %74 : vector<16x128xf32>
    %76 = arith.truncf %75 : vector<16x128xf32> to vector<16x128xbf16>
    %c0_28 = arith.constant 0 : index
    %c0_29 = arith.constant 0 : index
    %c0_30 = arith.constant 0 : index
    %77 = vector.load %arg6[%c0_28, %c0_29, %c0_30] : memref<1x16x128xbf16, #tpu.memory_space<vmem>>, vector<1x16x128xbf16>
    %78 = vector.shape_cast %77 : vector<1x16x128xbf16> to vector<16x128xbf16>
    %79 = vector.shape_cast %76 : vector<16x128xbf16> to vector<1x16x128xbf16>
    tpu.vector_store %arg6[%c0_28, %c0_29, %c0_30], %79 {strides = array<i32>} : memref<1x16x128xbf16, #tpu.memory_space<vmem>>, vector<1x16x128xbf16>,
    return
  }
  func.func @transform_0(%arg0: i32) -> (i32, i32, i32) {
    %c0_i32 = arith.constant 0 : i32
    %c0_i32_0 = arith.constant 0 : i32
    %c0_i32_1 = arith.constant 0 : i32
    return %arg0, %c0_i32, %c0_i32_0 : i32, i32, i32
  }
  func.func @transform_1(%arg0: i32) -> (i32, i32) {
    %c0_i32 = arith.constant 0 : i32
    %c0_i32_0 = arith.constant 0 : i32
    %c0_i32_1 = arith.constant 0 : i32
    return %c0_i32, %c0_i32_0 : i32, i32
  }
  func.func @transform_2(%arg0: i32) -> (i32, i32) {
    %c0_i32 = arith.constant 0 : i32
    %c0_i32_0 = arith.constant 0 : i32
    %c0_i32_1 = arith.constant 0 : i32
    return %c0_i32, %c0_i32_0 : i32, i32
  }
  func.func @transform_3(%arg0: i32) -> (i32, i32) {
    %c0_i32 = arith.constant 0 : i32
    %c0_i32_0 = arith.constant 0 : i32
    %c0_i32_1 = arith.constant 0 : i32
    return %c0_i32, %c0_i32_0 : i32, i32
  }
  func.func @transform_4(%arg0: i32) -> (i32, i32) {
    %c0_i32 = arith.constant 0 : i32
    %c0_i32_0 = arith.constant 0 : i32
    %c0_i32_1 = arith.constant 0 : i32
    return %c0_i32, %c0_i32_0 : i32, i32
  }
  func.func @transform_5(%arg0: i32) -> (i32, i32, i32) {
    %c0_i32 = arith.constant 0 : i32
    %c0_i32_0 = arith.constant 0 : i32
    %c0_i32_1 = arith.constant 0 : i32
    return %arg0, %c0_i32, %c0_i32_0 : i32, i32, i32
  }
}

module attributes {stable_mosaic.version = 11 : i64} {
  func.func @_matmul_bias_kernel(%arg0: i32, %arg1: i32, %arg2: i32, %arg3: memref<8x128xbf16, #tpu.memory_space<vmem>>, %arg4: memref<128x128xbf16, #tpu.memory_space<vmem>>, %arg5: memref<1x128xf32, #tpu.memory_space<vmem>>, %arg6: memref<8x128xf32, #tpu.memory_space<vmem>>, %arg7: memref<8x128xf32, #tpu.memory_space<vmem>>) attributes {dimension_semantics = [#tpu.dimension_semantics<parallel>, #tpu.dimension_semantics<parallel>, #tpu.dimension_semantics<arbitrary>], iteration_bounds = array<i64: 1, 1, 1>, scalar_prefetch = 0 : i64, scratch_operands = 1 : i64, tpu.core_type = #tpu.core_type<tc>, window_params = [{transform_indices = @transform_0, window_bounds = array<i64: 8, 128>}, {transform_indices = @transform_1, window_bounds = array<i64: 128, 128>}, {transform_indices = @transform_2, window_bounds = array<i64: 1, 128>}, {transform_indices = @transform_3, window_bounds = array<i64: 8, 128>}]} {
    %c0_i32 = arith.constant 0 : i32
    %0 = arith.cmpi eq, %arg2, %c0_i32 : i32
    %1 = arith.extui %0 : i1 to i32
    %c0_i32_0 = arith.constant 0 : i32
    %2 = arith.cmpi ne, %1, %c0_i32_0 : i32
    scf.if %2 {
      %cst_10 = arith.constant 0.000000e+00 : f32
      %12 = vector.broadcast %cst_10 : f32 to vector<8x128xf32>
      %c0_11 = arith.constant 0 : index
      %c0_12 = arith.constant 0 : index
      %13 = vector.load %arg7[%c0_11, %c0_12] : memref<8x128xf32, #tpu.memory_space<vmem>>, vector<8x128xf32>
      tpu.vector_store %arg7[%c0_11, %c0_12], %12 {strides = array<i32>} : memref<8x128xf32, #tpu.memory_space<vmem>>, vector<8x128xf32>,
    } else {
    }
    %c0 = arith.constant 0 : index
    %c0_1 = arith.constant 0 : index
    %3 = vector.load %arg7[%c0, %c0_1] : memref<8x128xf32, #tpu.memory_space<vmem>>, vector<8x128xf32>
    %c0_2 = arith.constant 0 : index
    %c0_3 = arith.constant 0 : index
    %4 = vector.load %arg3[%c0_2, %c0_3] : memref<8x128xbf16, #tpu.memory_space<vmem>>, vector<8x128xbf16>
    %c0_4 = arith.constant 0 : index
    %c0_5 = arith.constant 0 : index
    %5 = vector.load %arg4[%c0_4, %c0_5] : memref<128x128xbf16, #tpu.memory_space<vmem>>, vector<128x128xbf16>
    %cst = arith.constant dense<0.000000e+00> : vector<8x128xf32>
    %6 = tpu.matmul %4, %5, %cst {dimension_numbers = #tpu.dot_dimension_numbers<[1], [0], [0], [1], [0, 0, 1, 1], [], []>} : vector<8x128xbf16>, vector<128x128xbf16>, vector<8x128xf32> -> vector<8x128xf32>
    %7 = arith.addf %3, %6 : vector<8x128xf32>
    %c0_6 = arith.constant 0 : index
    %c0_7 = arith.constant 0 : index
    %8 = vector.load %arg7[%c0_6, %c0_7] : memref<8x128xf32, #tpu.memory_space<vmem>>, vector<8x128xf32>
    tpu.vector_store %arg7[%c0_6, %c0_7], %7 {strides = array<i32>} : memref<8x128xf32, #tpu.memory_space<vmem>>, vector<8x128xf32>,
    %c0_i32_8 = arith.constant 0 : i32
    %9 = arith.cmpi eq, %arg2, %c0_i32_8 : i32
    %10 = arith.extui %9 : i1 to i32
    %c0_i32_9 = arith.constant 0 : i32
    %11 = arith.cmpi ne, %10, %c0_i32_9 : i32
    scf.if %11 {
      %c0_10 = arith.constant 0 : index
      %c0_11 = arith.constant 0 : index
      %12 = vector.load %arg7[%c0_10, %c0_11] : memref<8x128xf32, #tpu.memory_space<vmem>>, vector<8x128xf32>
      %c0_12 = arith.constant 0 : index
      %c0_13 = arith.constant 0 : index
      %13 = vector.load %arg5[%c0_12, %c0_13] : memref<1x128xf32, #tpu.memory_space<vmem>>, vector<1x128xf32>
      %14 = vector.broadcast %13 : vector<1x128xf32> to vector<8x128xf32>
      %15 = arith.addf %12, %14 : vector<8x128xf32>
      %c0_14 = arith.constant 0 : index
      %c0_15 = arith.constant 0 : index
      %16 = vector.load %arg6[%c0_14, %c0_15] : memref<8x128xf32, #tpu.memory_space<vmem>>, vector<8x128xf32>
      tpu.vector_store %arg6[%c0_14, %c0_15], %15 {strides = array<i32>} : memref<8x128xf32, #tpu.memory_space<vmem>>, vector<8x128xf32>,
    } else {
    }
    return
  }
  func.func @transform_0(%arg0: i32, %arg1: i32, %arg2: i32) -> (i32, i32) {
    %c0_i32 = arith.constant 0 : i32
    return %arg0, %arg2 : i32, i32
  }
  func.func @transform_1(%arg0: i32, %arg1: i32, %arg2: i32) -> (i32, i32) {
    %c0_i32 = arith.constant 0 : i32
    return %arg2, %arg1 : i32, i32
  }
  func.func @transform_2(%arg0: i32, %arg1: i32, %arg2: i32) -> (i32, i32) {
    %c0_i32 = arith.constant 0 : i32
    %c0_i32_0 = arith.constant 0 : i32
    return %c0_i32, %arg1 : i32, i32
  }
  func.func @transform_3(%arg0: i32, %arg1: i32, %arg2: i32) -> (i32, i32) {
    %c0_i32 = arith.constant 0 : i32
    return %arg0, %arg1 : i32, i32
  }
}

module attributes {stable_mosaic.version = 11 : i64} {
  func.func @_dw_pw_kernel(%arg0: i32, %arg1: memref<1x30x128xbf16, #tpu.memory_space<vmem>>, %arg2: memref<9x128xf32, #tpu.memory_space<vmem>>, %arg3: memref<1x128xf32, #tpu.memory_space<vmem>>, %arg4: memref<128x128xbf16, #tpu.memory_space<vmem>>, %arg5: memref<1x128xf32, #tpu.memory_space<vmem>>, %arg6: memref<1x1x128xbf16, #tpu.memory_space<vmem>>) attributes {dimension_semantics = [#tpu.dimension_semantics<parallel>], iteration_bounds = array<i64: 2>, scalar_prefetch = 0 : i64, scratch_operands = 0 : i64, tpu.core_type = #tpu.core_type<tc>, window_params = [{transform_indices = @transform_0, window_bounds = array<i64: 1, 30, 128>}, {pipeline_mode = #tpu.pipeline_mode<synchronous>, transform_indices = @transform_1, window_bounds = array<i64: 9, 128>}, {pipeline_mode = #tpu.pipeline_mode<synchronous>, transform_indices = @transform_2, window_bounds = array<i64: 1, 128>}, {pipeline_mode = #tpu.pipeline_mode<synchronous>, transform_indices = @transform_3, window_bounds = array<i64: 128, 128>}, {pipeline_mode = #tpu.pipeline_mode<synchronous>, transform_indices = @transform_4, window_bounds = array<i64: 1, 128>}, {transform_indices = @transform_5, window_bounds = array<i64: 1, 1, 128>}]} {
    %c0 = arith.constant 0 : index
    %c0_0 = arith.constant 0 : index
    %0 = vector.load %arg2[%c0, %c0_0] : memref<9x128xf32, #tpu.memory_space<vmem>>, vector<9x128xf32>
    %c0_1 = arith.constant 0 : index
    %c0_2 = arith.constant 0 : index
    %c0_3 = arith.constant 0 : index
    %1 = vector.load %arg1[%c0_1, %c0_2, %c0_3] : memref<1x30x128xbf16, #tpu.memory_space<vmem>>, vector<1x4x128xbf16>
    %2 = vector.shape_cast %1 : vector<1x4x128xbf16> to vector<4x128xbf16>
    %3 = arith.extf %2 : vector<4x128xbf16> to vector<4x128xf32>
    %4 = vector.extract_strided_slice %0 {offsets = [0, 0], sizes = [1, 128], strides = [1, 1]} : vector<9x128xf32> to vector<1x128xf32>
    %5 = vector.broadcast %4 : vector<1x128xf32> to vector<4x128xf32>
    %6 = arith.mulf %3, %5 : vector<4x128xf32>
    %c0_4 = arith.constant 0 : index
    %c6 = arith.constant 6 : index
    %c0_5 = arith.constant 0 : index
    %7 = vector.load %arg1[%c0_4, %c6, %c0_5] : memref<1x30x128xbf16, #tpu.memory_space<vmem>>, vector<1x4x128xbf16>
    %8 = vector.shape_cast %7 : vector<1x4x128xbf16> to vector<4x128xbf16>
    %9 = arith.extf %8 : vector<4x128xbf16> to vector<4x128xf32>
    %10 = vector.extract_strided_slice %0 {offsets = [1, 0], sizes = [1, 128], strides = [1, 1]} : vector<9x128xf32> to vector<1x128xf32>
    %11 = vector.broadcast %10 : vector<1x128xf32> to vector<4x128xf32>
    %12 = arith.mulf %9, %11 : vector<4x128xf32>
    %c0_6 = arith.constant 0 : index
    %c12 = arith.constant 12 : index
    %c0_7 = arith.constant 0 : index
    %13 = vector.load %arg1[%c0_6, %c12, %c0_7] : memref<1x30x128xbf16, #tpu.memory_space<vmem>>, vector<1x4x128xbf16>
    %14 = vector.shape_cast %13 : vector<1x4x128xbf16> to vector<4x128xbf16>
    %15 = arith.extf %14 : vector<4x128xbf16> to vector<4x128xf32>
    %16 = vector.extract_strided_slice %0 {offsets = [2, 0], sizes = [1, 128], strides = [1, 1]} : vector<9x128xf32> to vector<1x128xf32>
    %17 = vector.broadcast %16 : vector<1x128xf32> to vector<4x128xf32>
    %18 = arith.mulf %15, %17 : vector<4x128xf32>
    %c0_8 = arith.constant 0 : index
    %c18 = arith.constant 18 : index
    %c0_9 = arith.constant 0 : index
    %19 = vector.load %arg1[%c0_8, %c18, %c0_9] : memref<1x30x128xbf16, #tpu.memory_space<vmem>>, vector<1x4x128xbf16>
    %20 = vector.shape_cast %19 : vector<1x4x128xbf16> to vector<4x128xbf16>
    %21 = arith.extf %20 : vector<4x128xbf16> to vector<4x128xf32>
    %22 = vector.extract_strided_slice %0 {offsets = [3, 0], sizes = [1, 128], strides = [1, 1]} : vector<9x128xf32> to vector<1x128xf32>
    %23 = vector.broadcast %22 : vector<1x128xf32> to vector<4x128xf32>
    %24 = arith.mulf %21, %23 : vector<4x128xf32>
    %c0_10 = arith.constant 0 : index
    %c22 = arith.constant 22 : index
    %c0_11 = arith.constant 0 : index
    %25 = vector.load %arg1[%c0_10, %c22, %c0_11] : memref<1x30x128xbf16, #tpu.memory_space<vmem>>, vector<1x4x128xbf16>
    %26 = vector.shape_cast %25 : vector<1x4x128xbf16> to vector<4x128xbf16>
    %27 = arith.extf %26 : vector<4x128xbf16> to vector<4x128xf32>
    %28 = vector.extract_strided_slice %0 {offsets = [4, 0], sizes = [1, 128], strides = [1, 1]} : vector<9x128xf32> to vector<1x128xf32>
    %29 = vector.broadcast %28 : vector<1x128xf32> to vector<4x128xf32>
    %30 = arith.mulf %27, %29 : vector<4x128xf32>
    %c0_12 = arith.constant 0 : index
    %c26 = arith.constant 26 : index
    %c0_13 = arith.constant 0 : index
    %31 = vector.load %arg1[%c0_12, %c26, %c0_13] : memref<1x30x128xbf16, #tpu.memory_space<vmem>>, vector<1x4x128xbf16>
    %32 = vector.shape_cast %31 : vector<1x4x128xbf16> to vector<4x128xbf16>
    %33 = arith.extf %32 : vector<4x128xbf16> to vector<4x128xf32>
    %34 = vector.extract_strided_slice %0 {offsets = [5, 0], sizes = [1, 128], strides = [1, 1]} : vector<9x128xf32> to vector<1x128xf32>
    %35 = vector.broadcast %34 : vector<1x128xf32> to vector<4x128xf32>
    %36 = arith.mulf %33, %35 : vector<4x128xf32>
    %c0_14 = arith.constant 0 : index
    %c2 = arith.constant 2 : index
    %c0_15 = arith.constant 0 : index
    %37 = vector.load %arg1[%c0_14, %c2, %c0_15] : memref<1x30x128xbf16, #tpu.memory_space<vmem>>, vector<1x4x128xbf16>
    %38 = vector.shape_cast %37 : vector<1x4x128xbf16> to vector<4x128xbf16>
    %39 = arith.extf %38 : vector<4x128xbf16> to vector<4x128xf32>
    %40 = vector.extract_strided_slice %0 {offsets = [6, 0], sizes = [1, 128], strides = [1, 1]} : vector<9x128xf32> to vector<1x128xf32>
    %41 = vector.broadcast %40 : vector<1x128xf32> to vector<4x128xf32>
    %42 = arith.mulf %39, %41 : vector<4x128xf32>
    %c0_16 = arith.constant 0 : index
    %c8 = arith.constant 8 : index
    %c0_17 = arith.constant 0 : index
    %43 = vector.load %arg1[%c0_16, %c8, %c0_17] : memref<1x30x128xbf16, #tpu.memory_space<vmem>>, vector<1x4x128xbf16>
    %44 = vector.shape_cast %43 : vector<1x4x128xbf16> to vector<4x128xbf16>
    %45 = arith.extf %44 : vector<4x128xbf16> to vector<4x128xf32>
    %46 = vector.extract_strided_slice %0 {offsets = [7, 0], sizes = [1, 128], strides = [1, 1]} : vector<9x128xf32> to vector<1x128xf32>
    %47 = vector.broadcast %46 : vector<1x128xf32> to vector<4x128xf32>
    %48 = arith.mulf %45, %47 : vector<4x128xf32>
    %c0_18 = arith.constant 0 : index
    %c14 = arith.constant 14 : index
    %c0_19 = arith.constant 0 : index
    %49 = vector.load %arg1[%c0_18, %c14, %c0_19] : memref<1x30x128xbf16, #tpu.memory_space<vmem>>, vector<1x4x128xbf16>
    %50 = vector.shape_cast %49 : vector<1x4x128xbf16> to vector<4x128xbf16>
    %51 = arith.extf %50 : vector<4x128xbf16> to vector<4x128xf32>
    %52 = vector.extract_strided_slice %0 {offsets = [8, 0], sizes = [1, 128], strides = [1, 1]} : vector<9x128xf32> to vector<1x128xf32>
    %53 = vector.broadcast %52 : vector<1x128xf32> to vector<4x128xf32>
    %54 = arith.mulf %51, %53 : vector<4x128xf32>
    %55 = arith.addf %6, %12 : vector<4x128xf32>
    %56 = arith.addf %18, %24 : vector<4x128xf32>
    %57 = arith.addf %30, %36 : vector<4x128xf32>
    %58 = arith.addf %42, %48 : vector<4x128xf32>
    %59 = arith.addf %55, %56 : vector<4x128xf32>
    %60 = arith.addf %57, %58 : vector<4x128xf32>
    %61 = arith.addf %59, %60 : vector<4x128xf32>
    %62 = arith.addf %61, %54 : vector<4x128xf32>
    %c0_20 = arith.constant 0 : index
    %c0_21 = arith.constant 0 : index
    %63 = vector.load %arg3[%c0_20, %c0_21] : memref<1x128xf32, #tpu.memory_space<vmem>>, vector<1x128xf32>
    %64 = vector.broadcast %63 : vector<1x128xf32> to vector<4x128xf32>
    %65 = arith.addf %62, %64 : vector<4x128xf32>
    %cst = arith.constant 0.000000e+00 : f32
    %66 = vector.broadcast %cst : f32 to vector<4x128xf32>
    %67 = arith.maximumf %65, %66 : vector<4x128xf32>
    %68 = arith.truncf %67 : vector<4x128xf32> to vector<4x128xbf16>
    %c0_22 = arith.constant 0 : index
    %c0_23 = arith.constant 0 : index
    %69 = vector.load %arg4[%c0_22, %c0_23] : memref<128x128xbf16, #tpu.memory_space<vmem>>, vector<128x128xbf16>
    %cst_24 = arith.constant dense<0.000000e+00> : vector<4x128xf32>
    %70 = tpu.matmul %68, %69, %cst_24 {dimension_numbers = #tpu.dot_dimension_numbers<[1], [0], [0], [1], [0, 0, 1, 1], [], []>} : vector<4x128xbf16>, vector<128x128xbf16>, vector<4x128xf32> -> vector<4x128xf32>
    %c0_25 = arith.constant 0 : index
    %c0_26 = arith.constant 0 : index
    %71 = vector.load %arg5[%c0_25, %c0_26] : memref<1x128xf32, #tpu.memory_space<vmem>>, vector<1x128xf32>
    %72 = vector.broadcast %71 : vector<1x128xf32> to vector<4x128xf32>
    %73 = arith.addf %70, %72 : vector<4x128xf32>
    %cst_27 = arith.constant 0.000000e+00 : f32
    %74 = vector.broadcast %cst_27 : f32 to vector<4x128xf32>
    %75 = arith.maximumf %73, %74 : vector<4x128xf32>
    %cst_28 = arith.constant dense<0.000000e+00> : vector<128xf32>
    %76 = vector.multi_reduction <add>, %75, %cst_28 [0] : vector<4x128xf32> to vector<128xf32>
    %77 = vector.shape_cast %76 : vector<128xf32> to vector<1x128xf32>
    %cst_29 = arith.constant 4.000000e+00 : f32
    %78 = vector.broadcast %cst_29 : f32 to vector<1x128xf32>
    %79 = arith.divf %77, %78 : vector<1x128xf32>
    %80 = arith.truncf %79 : vector<1x128xf32> to vector<1x128xbf16>
    %c0_30 = arith.constant 0 : index
    %c0_31 = arith.constant 0 : index
    %c0_32 = arith.constant 0 : index
    %81 = vector.load %arg6[%c0_30, %c0_31, %c0_32] : memref<1x1x128xbf16, #tpu.memory_space<vmem>>, vector<1x1x128xbf16>
    %82 = vector.shape_cast %81 : vector<1x1x128xbf16> to vector<1x128xbf16>
    %83 = vector.shape_cast %80 : vector<1x128xbf16> to vector<1x1x128xbf16>
    tpu.vector_store %arg6[%c0_30, %c0_31, %c0_32], %83 {strides = array<i32>} : memref<1x1x128xbf16, #tpu.memory_space<vmem>>, vector<1x1x128xbf16>,
    return
  }
  func.func @transform_0(%arg0: i32) -> (i32, i32, i32) {
    %c0_i32 = arith.constant 0 : i32
    %c0_i32_0 = arith.constant 0 : i32
    %c0_i32_1 = arith.constant 0 : i32
    return %arg0, %c0_i32, %c0_i32_0 : i32, i32, i32
  }
  func.func @transform_1(%arg0: i32) -> (i32, i32) {
    %c0_i32 = arith.constant 0 : i32
    %c0_i32_0 = arith.constant 0 : i32
    %c0_i32_1 = arith.constant 0 : i32
    return %c0_i32, %c0_i32_0 : i32, i32
  }
  func.func @transform_2(%arg0: i32) -> (i32, i32) {
    %c0_i32 = arith.constant 0 : i32
    %c0_i32_0 = arith.constant 0 : i32
    %c0_i32_1 = arith.constant 0 : i32
    return %c0_i32, %c0_i32_0 : i32, i32
  }
  func.func @transform_3(%arg0: i32) -> (i32, i32) {
    %c0_i32 = arith.constant 0 : i32
    %c0_i32_0 = arith.constant 0 : i32
    %c0_i32_1 = arith.constant 0 : i32
    return %c0_i32, %c0_i32_0 : i32, i32
  }
  func.func @transform_4(%arg0: i32) -> (i32, i32) {
    %c0_i32 = arith.constant 0 : i32
    %c0_i32_0 = arith.constant 0 : i32
    %c0_i32_1 = arith.constant 0 : i32
    return %c0_i32, %c0_i32_0 : i32, i32
  }
  func.func @transform_5(%arg0: i32) -> (i32, i32, i32) {
    %c0_i32 = arith.constant 0 : i32
    %c0_i32_0 = arith.constant 0 : i32
    %c0_i32_1 = arith.constant 0 : i32
    return %arg0, %c0_i32, %c0_i32_0 : i32, i32, i32
  }
}

</mosaic_0001>

<bundles_post_ra>
// kernel: mobilenet_v1_forward.6
= control target key start
LH: loop header
LB: loop body
LE: loop exit
PB: predicated region body
PF: predicated region fallthrough
CT: control target
= control target key end

     0   :  { %vm123_vm0 = vcmask 261120   ;;  %s646_s1 = inlined_call_operand.vmem [shape: bf16[32,128], index: 1, kind: input, shape index: {}]   ;;  %s647_s0 = inlined_call_operand.vmem [shape: bf16[128,32], index: 0, kind: input, shape index: {}]   ;;  %s648_s2 = inlined_call_operand.vmem [shape: f32[1,128], index: 2, kind: input, shape index: {}]   ;;  %s649_s3 = inlined_call_operand.vmem [shape: bf16[128,128], index: 3, kind: output, shape index: {}]  }
   0x1   :  { %v551_v0 = vld [vmem:[%s646_s1 + $0x8] sm:$0xff]   ;;  %v552_v1 = vld [vmem:[%s646_s1] sm:$0xff]   ;;  %v557_v6 = vld [vmem:[%s647_s0 + $0x10] sm:$0xff]  }
   0x2   :  { %527 = vmatprep.subr.bf16.mxu0 %v551_v0  ;;  %547 = vmatprep.subr.bf16.mxu1 %v551_v0  ;;  %v553_v2 = vld [vmem:[%s647_s0] sm:$0xff]   ;;  %v555_v4 = vld [vmem:[%s647_s0 + $0x8] sm:$0xff]   ;;  %v558_v7 = vld [vmem:[%s647_s0 + $0x30] sm:$0xff]  }
   0x3   :  { %528 = vmatpush3.bf16.msra.mxu0 %v551_v0  ;;  %549 = vmatpush3.bf16.msra.mxu1 %v551_v0  ;;  %v554_v3 = vld [vmem:[%s647_s0 + $0x20] sm:$0xff]   ;;  %v556_v5 = vld [vmem:[%s647_s0 + $0x28] sm:$0xff]   ;;  %v559_v8 = vld [vmem:[%s647_s0 + $0x18] sm:$0xff]  }
   0x4   :  { %529 = vmatprep.subr.bf16.mxu0 %v552_v1  ;;  %548 = vmatprep.subr.bf16.mxu1 %v552_v1  ;;  %v560_v9 = vld [vmem:[%s647_s0 + $0x38] sm:$0xff]   ;;  %v437_v10 = vld [vmem:[%s648_s2] ss:$0 sm:$0xff] }
   0x5   :  { %531 = vmatprep.mubr.msk.bf16.mxu0 %vm123_vm0, %v553_v2  ;;  %539 = vmatprep.mubr.msk.bf16.mxu1 %vm123_vm0, %v554_v3 }
   0x7   :  { %530 = vmatpush3.bf16.msra.mxu0 %v552_v1  ;;  %550 = vmatpush3.bf16.msra.mxu1 %v552_v1 }
   0xa   :  { %532 = vmatmul.mubr.msk.bf16.vlgmr.msra.gmra.mxu0 %vm123_vm0, %v555_v4  ;;  %540 = vmatmul.mubr.msk.bf16.vlgmr.msra.gmra.mxu1 %vm123_vm0, %v556_v5 }
   0xb   :  { %535 = vmatprep.mubr.msk.bf16.mxu0 %vm123_vm0, %v557_v6  ;;  %543 = vmatprep.mubr.msk.bf16.mxu1 %vm123_vm0, %v558_v7 }
  0x12   :  { %536 = vmatmul.mubr.msk.bf16.gmra.mxu0 %vm123_vm0, %v559_v8  ;;  %544 = vmatmul.mubr.msk.bf16.gmra.mxu1 %vm123_vm0, %v560_v9 }
  0xca   :  { %v533_v11 = vpop.f32.mrf.mxu0  ;;  %v541_v12 = vpop.f32.mrf.mxu1 }
  0xcb   :  { %v305_v13 = vadd.f32 %v533_v11, %v437_v10  ;;  %v313_v14 = vadd.f32 %v541_v12, %v437_v10 }
  0xcc   :  { %v182_v15 = vpop.f32.mrf.mxu0  ;;  %v214_v16 = vpop.f32.mrf.mxu1 }
  0xcd   :  { %v303_v17 = vadd.f32 %v437_v10, %v182_v15  ;;  %v311_v18 = vadd.f32 %v437_v10, %v214_v16  ;;  %v321_v23 = vmax.f32 %v305_v13, 0.0  ;;  %v329_v24 = vmax.f32 %v313_v14, 0.0 }
  0xce   :  { %v534_v19 = vpop.f32.mrf.mxu0  ;;  %v542_v20 = vpop.f32.mrf.mxu1 }
  0xcf   :  { %v306_v21 = vadd.f32 %v534_v19, %v437_v10  ;;  %v314_v22 = vadd.f32 %v542_v20, %v437_v10  ;;  %v319_v31 = vmax.f32 %v303_v17, 0.0  ;;  %v327_v32 = vmax.f32 %v311_v18, 0.0 }
  0xd0   :  { %v185_v25 = vpop.f32.mrf.mxu0  ;;  %v217_v26 = vpop.f32.mrf.mxu1 }
  0xd1   :  { %v322_v27 = vmax.f32 %v306_v21, 0.0  ;;  %v330_v28 = vmax.f32 %v314_v22, 0.0  ;;  %v304_v29 = vadd.f32 %v437_v10, %v185_v25  ;;  %v312_v30 = vadd.f32 %v437_v10, %v217_v26 }
  0xd2   :  { %v537_v33 = vpop.f32.mrf.mxu0  ;;  %v545_v34 = vpop.f32.mrf.mxu1 }
  0xd3   :  { %v478_v35 = vpack.c.bf16 %v322_v27, %v321_v23  ;;  %v498_v36 = vpack.c.bf16 %v330_v28, %v329_v24  ;;  %v320_v37 = vmax.f32 %v304_v29, 0.0  ;;  %v328_v38 = vmax.f32 %v312_v30, 0.0 }
  0xd4   :  { %v309_v39 = vadd.f32 %v537_v33, %v437_v10  ;;  %v317_v40 = vadd.f32 %v545_v34, %v437_v10  ;;  %v198_v41 = vpop.f32.mrf.mxu0  ;;  %v230_v42 = vpop.f32.mrf.mxu1 }
  0xd5   :  { %510 = vst [vmem:[%s649_s3 + $0x8] sm:$0xff] %v478_v35   ;;  %514 = vst [vmem:[%s649_s3 + $0x28] sm:$0xff] %v498_v36   ;;  %v473_v43 = vpack.c.bf16 %v320_v37, %v319_v31  ;;  %v493_v44 = vpack.c.bf16 %v328_v38, %v327_v32  ;;  %v307_v45 = vadd.f32 %v437_v10, %v198_v41 }
  0xd6   :  { %v315_v46 = vadd.f32 %v437_v10, %v230_v42  ;;  %v538_v47 = vpop.f32.mrf.mxu0  ;;  %v546_v48 = vpop.f32.mrf.mxu1  ;;  %v325_v51 = vmax.f32 %v309_v39, 0.0  ;;  %v333_v52 = vmax.f32 %v317_v40, 0.0 }
  0xd7   :  { %474 = vst [vmem:[%s649_s3] sm:$0xff] %v473_v43   ;;  %513 = vst [vmem:[%s649_s3 + $0x20] sm:$0xff] %v493_v44   ;;  %v310_v49 = vadd.f32 %v538_v47, %v437_v10  ;;  %v318_v50 = vadd.f32 %v546_v48, %v437_v10  ;;  %v323_v59 = vmax.f32 %v307_v45, 0.0 }
  0xd8   :  { %v201_v53 = vpop.f32.mrf.mxu0  ;;  %v233_v54 = vpop.f32.mrf.mxu1  ;;  %v331_v60 = vmax.f32 %v315_v46, 0.0 }
  0xd9   :  { %v326_v55 = vmax.f32 %v310_v49, 0.0  ;;  %v334_v56 = vmax.f32 %v318_v50, 0.0  ;;  %v308_v57 = vadd.f32 %v437_v10, %v201_v53  ;;  %v316_v58 = vadd.f32 %v437_v10, %v233_v54 }
  0xdb   :  { %v488_v61 = vpack.c.bf16 %v326_v55, %v325_v51  ;;  %v508_v62 = vpack.c.bf16 %v334_v56, %v333_v52  ;;  %v324_v63 = vmax.f32 %v308_v57, 0.0  ;;  %v332_v0 = vmax.f32 %v316_v58, 0.0 }
  0xdd   :  { %512 = vst [vmem:[%s649_s3 + $0x18] sm:$0xff] %v488_v61   ;;  %516 = vst [vmem:[%s649_s3 + $0x38] sm:$0xff] %v508_v62   ;;  %v483_v1 = vpack.c.bf16 %v324_v63, %v323_v59  ;;  %v503_v2 = vpack.c.bf16 %v332_v0, %v331_v60 }
  0xdf   :  { %511 = vst [vmem:[%s649_s3 + $0x10] sm:$0xff] %v483_v1   ;;  %515 = vst [vmem:[%s649_s3 + $0x30] sm:$0xff] %v503_v2  }

// kernel: mobilenet_v1_forward.7
= control target key start
LH: loop header
LB: loop body
LE: loop exit
PB: predicated region body
PF: predicated region fallthrough
CT: control target
= control target key end

     0   :  { %s987_s18 = smov 0   ;;  %s1270_s0 = inlined_call_operand.vmem [shape: bf16[2,240,128], index: 0, kind: input, shape index: {}]   ;;  %s1271_s1 = inlined_call_operand.vmem [shape: f32[9,128], index: 1, kind: input, shape index: {}]   ;;  %s1272_s2 = inlined_call_operand.vmem [shape: f32[1,128], index: 2, kind: input, shape index: {}]   ;;  %s1273_s3 = inlined_call_operand.vmem [shape: bf16[128,128], index: 3, kind: input, shape index: {}]   ;;  %s1274_s4 = inlined_call_operand.vmem [shape: f32[1,128], index: 4, kind: input, shape index: {}]   ;;  %s1275_s5 = inlined_call_operand.vmem [shape: bf16[2,64,128], index: 5, kind: output, shape index: {}]  }
   0x1 LB: > { %s740_s19 = sadd.s32 4294967295, %s955_s18   ;;  %p744_p0 = scmp.ge.s32.totalorder %s955_s18, 1  ;;  %s955_s18 = sphi %s987_s18, %s15_s18  }
   0x2   : > { %p187_p1 = scmp.lt.s32.totalorder %s955_s18, 3 }
   0x4   : > { %p188_p2 = pnand %p744_p0, %p187_p1 }
   0x5   : > { %p215_p3 = scmp.lt.s32.totalorder (!%p188_p2), %s740_s19, 1 }
   0x6   : > { %191 = sbr.rel (%p188_p2) target bundleno = 282 (0x11a), region = 40 }
   0xb   : > { %v941_v0 = vld [vmem:[%s1273_s3 + $0x38] sm:$0xff]   ;;  %v244_v1 = vlaneseq  ;;  %v942_v2 = vld [vmem:[%s1273_s3 + $0x30] sm:$0xff]   ;;  %s1279_s19 = smov (!%p215_p3, %s740_s19), 1  ;;  %v943_v4 = vld [vmem:[%s1273_s3 + $0x28] sm:$0xff]  }
   0xc   : > { %892 = vmatprep.subr.bf16.mxu0 %v941_v0  ;;  %916 = vmatprep.subr.bf16.mxu1 %v941_v0  ;;  %s932_s26 = smul.u32 120, %s1279_s19  ;;  %v944_v7 = vld [vmem:[%s1273_s3 + $0x20] sm:$0xff]   ;;  %v945_v27 = vld [vmem:[%s1273_s3 + $0x18] sm:$0xff]   ;;  %v1057_v37 = vld [vmem:[%s1271_s1 + $0x8] ss:$0 sm:$0xff]  ;;  %s769_s25 = sshll.u32 %s1279_s19, 5 }
   0xd   : > { %893 = vmatpush3.bf16.msra.mxu0 %v941_v0  ;;  %924 = vmatpush3.bf16.msra.mxu1 %v941_v0  ;;  %v1003_v3 = vshrl.u32 %v244_v1, 7  ;;  %v226_v8 = vld [vmem:[%s1271_s1] sm:$0xff]  ;;  %v946_v46 = vld [vmem:[%s1273_s3 + $0x10] sm:$0xff]   ;;  %v947_v1 = vld [vmem:[%s1273_s3 + $0x8] sm:$0xff]   ;;  %s224_s28 = scalar_lea.vmem %s1275_s5, %s769_s25 }
   0xe   : > { %894 = vmatprep.subr.bf16.mxu0 %v942_v2  ;;  %917 = vmatprep.subr.bf16.mxu1 %v942_v2  ;;  %s1013_s29 = scalar_lea.vmem %s1270_s0, %s932_s26 }
   0xf   : > { %v246_v5 = vsub.s32 0, %v1003_v3  ;;  %v274_v6 = vsub.s32 1, %v1003_v3  ;;  %v779_v9 = vld [vmem:[%s1013_s29] sm:$0xff]   ;;  %v302_v10 = vsub.s32 2, %v1003_v3  ;;  %v316_v11 = vsub.s32 3, %v1003_v3  ;;  %v862_v14 = vld [vmem:[%s1013_s29 + $0x8] sm:$0xff]  }
  0x10   : > { %v780_v12 = vunpack.c.l.bf16 %v779_v9  ;;  %v781_v13 = vunpack.c.h.bf16 %v779_v9  ;;  %v865_v16 = vld [vmem:[%s1013_s29 + $0x28] sm:$0xff]   ;;  %v866_v17 = vld [vmem:[%s1013_s29 + $0x30] sm:$0xff]   ;;  %v330_v22 = vsub.s32 4, %v1003_v3  ;;  %v1034_v23 = vunpack.c.l.bf16 %v862_v14  ;;  %v870_v32 = vld [vmem:[%s1013_s29 + $0x58] sm:$0xff]  }
  0x11   : > { %895 = vmatpush3.bf16.msra.mxu0 %v942_v2  ;;  %925 = vmatpush3.bf16.msra.mxu1 %v942_v2  ;;  %v1026_v15 = vrot.slane %v226_v8, %v246_v5  ;;  %v1030_v18 = vrot.slane %v226_v8, %v274_v6  ;;  %v796_v19 = vunpack.c.l.bf16 %v865_v16  ;;  %v797_v20 = vunpack.c.h.bf16 %v865_v16  ;;  %v869_v21 = vld [vmem:[%s1013_s29 + $0x50] sm:$0xff]   ;;  %v864_v60 = vld [vmem:[%s1013_s29 + $0x18] sm:$0xff]  }
  0x12   : > { %896 = vmatprep.subr.bf16.mxu0 %v943_v4  ;;  %918 = vmatprep.subr.bf16.mxu1 %v943_v4  ;;  %v1036_v24 = vunpack.c.h.bf16 %v862_v14  ;;  %v1043_v28 = vunpack.c.l.bf16 %v866_v17  ;;  %v1045_v29 = vunpack.c.h.bf16 %v866_v17  ;;  %v812_v30 = vunpack.c.l.bf16 %v869_v21  ;;  %v863_v51 = vld [vmem:[%s1013_s29 + $0x10] sm:$0xff]   ;;  %v867_v6 = vld [vmem:[%s1013_s29 + $0x38] sm:$0xff]   ;;  %v868_v17 = vld [vmem:[%s1013_s29 + $0x40] sm:$0xff]  }
  0x13   : > { %v248_v25 = vmul.f32 %v780_v12, %v1026_v15  ;;  %v249_v26 = vmul.f32 %v781_v13, %v1026_v15  ;;  %v813_v31 = vunpack.c.h.bf16 %v869_v21  ;;  %v276_v33 = vmul.f32 %v796_v19, %v1030_v18  ;;  %v872_v19 = vld [vmem:[%s1013_s29 + $0x68] sm:$0xff]  }
  0x14   : > { %v277_v34 = vmul.f32 %v797_v20, %v1030_v18  ;;  %v1050_v35 = vrot.slane %v226_v8, %v302_v10  ;;  %v1052_v36 = vrot.slane %v226_v8, %v316_v11  ;;  %v1059_v38 = vrot.slane %v226_v8, %v330_v22  ;;  %v871_v11 = vld [vmem:[%s1013_s29 + $0x60] sm:$0xff]  }
  0x15   : > { %897 = vmatpush3.bf16.msra.mxu0 %v943_v4  ;;  %926 = vmatpush3.bf16.msra.mxu1 %v943_v4  ;;  %v344_v39 = vsub.s32 5, %v1003_v3  ;;  %v358_v40 = vsub.s32 6, %v1003_v3  ;;  %v372_v41 = vsub.s32 7, %v1003_v3  ;;  %v1064_v42 = vunpack.c.l.bf16 %v870_v32 }
  0x16   : > { %898 = vmatprep.subr.bf16.mxu0 %v944_v7  ;;  %919 = vmatprep.subr.bf16.mxu1 %v944_v7  ;;  %v304_v43 = vmul.f32 %v812_v30, %v1050_v35  ;;  %v305_v44 = vmul.f32 %v813_v31, %v1050_v35  ;;  %v318_v45 = vmul.f32 %v781_v13, %v1052_v36  ;;  %v1072_v47 = vunpack.c.h.bf16 %v870_v32 }
  0x17   : > { %v319_v48 = vmul.f32 %v1034_v23, %v1052_v36  ;;  %v332_v49 = vmul.f32 %v797_v20, %v1059_v38  ;;  %v333_v50 = vmul.f32 %v1043_v28, %v1059_v38  ;;  %v1080_v52 = vrot.slane %v226_v8, %v344_v39 }
  0x18   : > { %v1082_v53 = vrot.slane %v226_v8, %v358_v40  ;;  %v1084_v54 = vrot.slane %v226_v8, %v372_v41  ;;  %v402_v55 = vmul.f32 %v1064_v42, %v1057_v37  ;;  %v403_v56 = vmul.f32 %v1072_v47, %v1057_v37 }
  0x19   : > { %899 = vmatpush3.bf16.msra.mxu0 %v944_v7  ;;  %927 = vmatpush3.bf16.msra.mxu1 %v944_v7  ;;  %v410_v57 = vadd.f32 %v276_v33, %v248_v25  ;;  %v411_v58 = vadd.f32 %v277_v34, %v249_v26  ;;  %v418_v59 = vadd.f32 %v318_v45, %v304_v43  ;;  %v1096_v0 = vunpack.c.l.bf16 %v863_v51  ;;  %v948_v26 = vld [vmem:[%s1273_s3] sm:$0xff]  }
  0x1a   : > { %900 = vmatprep.subr.bf16.mxu0 %v945_v27  ;;  %920 = vmatprep.subr.bf16.mxu1 %v945_v27  ;;  %v346_v61 = vmul.f32 %v813_v31, %v1080_v52  ;;  %v347_v62 = vmul.f32 %v1064_v42, %v1080_v52  ;;  %v360_v63 = vmul.f32 %v1034_v23, %v1082_v53  ;;  %v1107_v5 = vunpack.c.h.bf16 %v863_v51 }
  0x1b   : > { %v361_v2 = vmul.f32 %v1036_v24, %v1082_v53  ;;  %v374_v3 = vmul.f32 %v1043_v28, %v1084_v54  ;;  %v375_v4 = vmul.f32 %v1045_v29, %v1084_v54  ;;  %v419_v7 = vadd.f32 %v319_v48, %v305_v44 }
  0x1c   : > { %v426_v8 = vadd.f32 %v346_v61, %v332_v49  ;;  %v427_v9 = vadd.f32 %v347_v62, %v333_v50  ;;  %v1110_v10 = vunpack.c.l.bf16 %v864_v60  ;;  %v442_v14 = vadd.f32 %v418_v59, %v410_v57  ;;  %v1160_v61 = vld [vmem:[%s1013_s29 + $0x20] sm:$0xff]  }
  0x1d   : > { %901 = vmatpush3.bf16.msra.mxu0 %v945_v27  ;;  %928 = vmatpush3.bf16.msra.mxu1 %v945_v27  ;;  %v434_v12 = vadd.f32 %v374_v3, %v360_v63  ;;  %v435_v13 = vadd.f32 %v375_v4, %v361_v2  ;;  %v1113_v16 = vunpack.c.h.bf16 %v864_v60  ;;  %v443_v20 = vadd.f32 %v419_v7, %v411_v58 }
  0x1e   : > { %902 = vmatprep.subr.bf16.mxu0 %v946_v46  ;;  %921 = vmatprep.subr.bf16.mxu1 %v946_v46  ;;  %v252_v21 = vmul.f32 %v1096_v0, %v1026_v15  ;;  %v1119_v22 = vunpack.c.l.bf16 %v867_v6  ;;  %v1121_v25 = vunpack.c.h.bf16 %v867_v6  ;;  %v253_v31 = vmul.f32 %v1107_v5, %v1026_v15 }
  0x1f   : > { %v450_v27 = vadd.f32 %v434_v12, %v426_v8  ;;  %v451_v30 = vadd.f32 %v435_v13, %v427_v9  ;;  %v1128_v32 = vunpack.c.l.bf16 %v871_v11  ;;  %v1130_v33 = vunpack.c.l.bf16 %v868_v17 }
  0x20   : > { %v280_v34 = vmul.f32 %v1119_v22, %v1030_v18  ;;  %v1134_v39 = vunpack.c.h.bf16 %v871_v11  ;;  %v1136_v40 = vunpack.c.l.bf16 %v872_v19  ;;  %v281_v44 = vmul.f32 %v1121_v25, %v1030_v18 }
  0x21   : > { %903 = vmatpush3.bf16.msra.mxu0 %v946_v46  ;;  %929 = vmatpush3.bf16.msra.mxu1 %v946_v46  ;;  %v458_v41 = vadd.f32 %v450_v27, %v442_v14  ;;  %v459_v43 = vadd.f32 %v451_v30, %v443_v20  ;;  %v308_v45 = vmul.f32 %v1128_v32, %v1050_v35  ;;  %v1145_v46 = vld [vmem:[%s1272_s2] ss:$0 sm:$0xff]  ;;  %v1147_v48 = vunpack.c.h.bf16 %v868_v17 }
  0x22   : > { %904 = vmatprep.subr.bf16.mxu0 %v947_v1  ;;  %922 = vmatprep.subr.bf16.mxu1 %v947_v1  ;;  %v309_v49 = vmul.f32 %v1134_v39, %v1050_v35  ;;  %v322_v50 = vmul.f32 %v1107_v5, %v1052_v36  ;;  %v323_v51 = vmul.f32 %v1110_v10, %v1052_v36  ;;  %v1155_v59 = vunpack.c.h.bf16 %v872_v19 }
  0x23   : > { %v466_v57 = vadd.f32 %v458_v41, %v402_v55  ;;  %v467_v58 = vadd.f32 %v459_v43, %v403_v56  ;;  %v336_v60 = vmul.f32 %v1121_v25, %v1059_v38  ;;  %v337_v62 = vmul.f32 %v1130_v33, %v1059_v38 }
  0x24   : > { %v350_v63 = vmul.f32 %v1134_v39, %v1080_v52  ;;  %v364_v55 = vmul.f32 %v1110_v10, %v1082_v53  ;;  %v365_v3 = vmul.f32 %v1113_v16, %v1082_v53  ;;  %v378_v4 = vmul.f32 %v1130_v33, %v1084_v54 }
  0x25   : > { %905 = vmatpush3.bf16.msra.mxu0 %v947_v1  ;;  %930 = vmatpush3.bf16.msra.mxu1 %v947_v1  ;;  %v351_v1 = vmul.f32 %v1136_v40, %v1080_v52  ;;  %v481_v56 = vadd.f32 %v1145_v46, %v466_v57  ;;  %v482_v2 = vadd.f32 %v1145_v46, %v467_v58 }
  0x26   : > { %906 = vmatprep.subr.bf16.mxu0 %v948_v26  ;;  %923 = vmatprep.subr.bf16.mxu1 %v948_v26  ;;  %v379_v6 = vmul.f32 %v1147_v48, %v1084_v54  ;;  %v406_v7 = vmul.f32 %v1136_v40, %v1057_v37  ;;  %v407_v8 = vmul.f32 %v1155_v59, %v1057_v37 }
  0x27   : > { %v489_v11 = vmax.f32 %v481_v56, 0.0  ;;  %v490_v12 = vmax.f32 %v482_v2, 0.0  ;;  %v414_v13 = vadd.f32 %v280_v34, %v252_v21  ;;  %v415_v14 = vadd.f32 %v281_v44, %v253_v31 }
  0x28   : > { %v422_v17 = vadd.f32 %v322_v50, %v308_v45  ;;  %v423_v19 = vadd.f32 %v323_v51, %v309_v49  ;;  %v430_v20 = vadd.f32 %v350_v63, %v336_v60  ;;  %v431_v27 = vadd.f32 %v351_v1, %v337_v62  ;;  %v326_v51 = vld [vmem:[%s1013_s29 + $0x48] sm:$0xff]   ;;  %v340_v1 = vld [vmem:[%s1013_s29 + $0x70] sm:$0xf] }
  0x29   : > { %907 = vmatpush3.bf16.msra.mxu0 %v948_v26  ;;  %931 = vmatpush3.bf16.msra.mxu1 %v948_v26  ;;  %v497_v26 = vpack.c.bf16 %v490_v12, %v489_v11  ;;  %v438_v30 = vadd.f32 %v378_v4, %v364_v55  ;;  %v439_v41 = vadd.f32 %v379_v6, %v365_v3  ;;  %v327_v6 = vunpack.c.l.bf16 %v326_v51 }
  0x2a   : > { %v250_v43 = vmul.f32 %v1034_v23, %v1026_v15  ;;  %v446_v57 = vadd.f32 %v422_v17, %v414_v13  ;;  %v447_v58 = vadd.f32 %v423_v19, %v415_v14  ;;  %v251_v9 = vmul.f32 %v1036_v24, %v1026_v15 }
  0x2b   : > { %v278_v21 = vmul.f32 %v1043_v28, %v1030_v18  ;;  %908 = vmatprep.mubr.bf16.mxu0 %v497_v26  ;;  %v454_v31 = vadd.f32 %v438_v30, %v430_v20  ;;  %v455_v34 = vadd.f32 %v439_v41, %v431_v27  ;;  %v279_v44 = vmul.f32 %v1045_v29, %v1030_v18 }
  0x2c   : > { %v306_v45 = vmul.f32 %v1064_v42, %v1050_v35  ;;  %v307_v23 = vmul.f32 %v1072_v47, %v1050_v35  ;;  %v320_v49 = vmul.f32 %v1036_v24, %v1052_v36  ;;  %v321_v50 = vmul.f32 %v1096_v0, %v1052_v36 }
  0x2d   : > { %v334_v28 = vmul.f32 %v1045_v29, %v1059_v38  ;;  %v462_v60 = vadd.f32 %v454_v31, %v446_v57  ;;  %v463_v62 = vadd.f32 %v455_v34, %v447_v58  ;;  %v335_v63 = vmul.f32 %v1119_v22, %v1059_v38 }
  0x2e   : > { %v348_v42 = vmul.f32 %v1072_v47, %v1080_v52  ;;  %v349_v55 = vmul.f32 %v1128_v32, %v1080_v52  ;;  %v362_v24 = vmul.f32 %v1096_v0, %v1082_v53  ;;  %v363_v56 = vmul.f32 %v1107_v5, %v1082_v53 }
  0x2f   : > { %v376_v29 = vmul.f32 %v1119_v22, %v1084_v54  ;;  %v470_v2 = vadd.f32 %v462_v60, %v406_v7  ;;  %v471_v3 = vadd.f32 %v463_v62, %v407_v8  ;;  %v377_v4 = vmul.f32 %v1121_v25, %v1084_v54 }
  0x30   : > { %v412_v47 = vadd.f32 %v278_v21, %v250_v43  ;;  %v413_v11 = vadd.f32 %v279_v44, %v251_v9  ;;  %v420_v12 = vadd.f32 %v320_v49, %v306_v45  ;;  %v341_v13 = vunpack.c.l.bf16 %v340_v1 }
  0x31   : > { %v485_v14 = vadd.f32 %v1145_v46, %v470_v2  ;;  %v486_v0 = vadd.f32 %v1145_v46, %v471_v3  ;;  %v421_v17 = vadd.f32 %v321_v50, %v307_v23  ;;  %v428_v19 = vadd.f32 %v348_v42, %v334_v28  ;;  %v876_v50 = vld [vmem:[%s1013_s29 + $0x70] sm:$0xff]  }
  0x32   : > { %v429_v5 = vadd.f32 %v349_v55, %v335_v63  ;;  %v436_v20 = vadd.f32 %v376_v29, %v362_v24  ;;  %v437_v27 = vadd.f32 %v377_v4, %v363_v56  ;;  %v444_v22 = vadd.f32 %v420_v12, %v412_v47 }
  0x33   : > { %v493_v7 = vmax.f32 %v485_v14, 0.0  ;;  %v494_v8 = vmax.f32 %v486_v0, 0.0  ;;  %v404_v25 = vmul.f32 %v1128_v32, %v1057_v37  ;;  %v445_v26 = vadd.f32 %v421_v17, %v413_v11 }
  0x34   : > { %v405_v9 = vmul.f32 %v1134_v39, %v1057_v37  ;;  %v452_v30 = vadd.f32 %v436_v20, %v428_v19  ;;  %v453_v41 = vadd.f32 %v437_v27, %v429_v5  ;;  %v254_v43 = vmul.f32 %v1110_v10, %v1026_v15 }
  0x35   : > { %v499_v57 = vpack.c.bf16 %v494_v8, %v493_v7  ;;  %v255_v58 = vmul.f32 %v1113_v16, %v1026_v15  ;;  %v282_v21 = vmul.f32 %v1130_v33, %v1030_v18  ;;  %v283_v32 = vmul.f32 %v1147_v48, %v1030_v18 }
  0x36   : > { %v460_v31 = vadd.f32 %v452_v30, %v444_v22  ;;  %v461_v34 = vadd.f32 %v453_v41, %v445_v26  ;;  %v310_v39 = vmul.f32 %v1136_v40, %v1050_v35  ;;  %v311_v44 = vmul.f32 %v1155_v59, %v1050_v35 }
  0x37   : > { %912 = vmatprep.mubr.bf16.mxu1 %v499_v57  ;;  %v324_v10 = vmul.f32 %v1113_v16, %v1052_v36  ;;  %v1276_v15 = vunpack.c.l.bf16 %v1160_v61  ;;  %v338_v33 = vmul.f32 %v1147_v48, %v1059_v38  ;;  %v339_v18 = vmul.f32 %v1059_v38, %v327_v6 }
  0x38   : > { %v468_v23 = vadd.f32 %v460_v31, %v404_v25  ;;  %v469_v49 = vadd.f32 %v461_v34, %v405_v9  ;;  %v352_v40 = vmul.f32 %v1155_v59, %v1080_v52  ;;  %v355_v35 = vunpack.c.h.bf16 %v1160_v61 }
  0x39   : > { %v325_v45 = vmul.f32 %v1052_v36, %v1276_v15  ;;  %v353_v28 = vmul.f32 %v1080_v52, %v341_v13  ;;  %v1277_v16 = vmov %v1276_v15  ;;  %v369_v36 = vunpack.c.h.bf16 %v326_v51 }
  0x3a   : > { %v366_v60 = vmul.f32 %v1082_v53, %v1277_v16  ;;  %v380_v62 = vmul.f32 %v1084_v54, %v327_v6  ;;  %v483_v48 = vadd.f32 %v1145_v46, %v468_v23  ;;  %v484_v38 = vadd.f32 %v1145_v46, %v469_v49 }
  0x3b   : > { %v367_v63 = vmul.f32 %v1082_v53, %v355_v35  ;;  %v416_v42 = vadd.f32 %v282_v21, %v254_v43  ;;  %v381_v59 = vmul.f32 %v1084_v54, %v369_v36  ;;  %v840_v1 = vunpack.c.l.bf16 %v876_v50 }
  0x3c   : > { %v841_v55 = vunpack.c.h.bf16 %v876_v50  ;;  %v417_v24 = vadd.f32 %v283_v32, %v255_v58  ;;  %v491_v52 = vmax.f32 %v483_v48, 0.0  ;;  %v492_v56 = vmax.f32 %v484_v38, 0.0 }
  0x3d   : > { %v424_v61 = vadd.f32 %v324_v10, %v310_v39  ;;  %v425_v29 = vadd.f32 %v325_v45, %v311_v44  ;;  %v432_v2 = vadd.f32 %v352_v40, %v338_v33  ;;  %v433_v51 = vadd.f32 %v353_v28, %v339_v18 }
  0x3e   : > { %v440_v3 = vadd.f32 %v380_v62, %v366_v60  ;;  %v441_v4 = vadd.f32 %v381_v59, %v367_v63  ;;  %v498_v6 = vpack.c.bf16 %v492_v56, %v491_v52  ;;  %v408_v12 = vmul.f32 %v840_v1, %v1057_v37 }
  0x3f   : > { %v448_v47 = vadd.f32 %v424_v61, %v416_v42  ;;  %v449_v11 = vadd.f32 %v425_v29, %v417_v24  ;;  %v409_v53 = vmul.f32 %v841_v55, %v1057_v37  ;;  %v750_v37 = vld [vmem:[%s1274_s4] ss:$0 sm:$0xff] }
  0x40   : > { %v456_v13 = vadd.f32 %v440_v3, %v432_v2  ;;  %v457_v54 = vadd.f32 %v441_v4, %v433_v51  ;;  %909 = vmatmul.mubr.bf16.vlgmr.msra.gmra.mxu0 %v498_v6 }
  0x42   : > { %v464_v14 = vadd.f32 %v456_v13, %v448_v47  ;;  %v465_v0 = vadd.f32 %v457_v54, %v449_v11 }
  0x44   : > { %v472_v17 = vadd.f32 %v464_v14, %v408_v12  ;;  %v473_v19 = vadd.f32 %v465_v0, %v409_v53 }
  0x46   : > { %v487_v5 = vadd.f32 %v1145_v46, %v472_v17  ;;  %v488_v20 = vadd.f32 %v1145_v46, %v473_v19 }
  0x48   : > { %v495_v27 = vmax.f32 %v487_v5, 0.0  ;;  %v496_v22 = vmax.f32 %v488_v20, 0.0 }
  0x4a   : > { %v500_v7 = vpack.c.bf16 %v496_v22, %v495_v27 }
  0x4c   : > { %913 = vmatmul.mubr.bf16.vlgmr.msra.gmra.mxu1 %v500_v7 }
 0x100   : > { %v910_v8 = vpop.f32.mrf.mxu0 }
 0x101   : > { %v615_v26 = vadd.f32 %v910_v8, %v750_v37 }
 0x102   : > { %v606_v25 = vpop.f32.mrf.mxu0 }
 0x103   : > { %v607_v30 = vadd.f32 %v750_v37, %v606_v25  ;;  %v639_v57 = vmax.f32 %v615_v26, 0.0 }
 0x104   : > { %v911_v9 = vpop.f32.mrf.mxu0 }
 0x105   : > { %v618_v41 = vadd.f32 %v911_v9, %v750_v37  ;;  %v637_v46 = vmax.f32 %v607_v30, 0.0 }
 0x106   : > { %v609_v43 = vpop.f32.mrf.mxu0 }
 0x107   : > { %v640_v58 = vmax.f32 %v618_v41, 0.0  ;;  %v610_v21 = vadd.f32 %v750_v37, %v609_v43 }
 0x109   : > { %v850_v32 = vpack.c.bf16 %v640_v58, %v639_v57  ;;  %v638_v31 = vmax.f32 %v610_v21, 0.0 }
 0x10b   : > { %877 = vst [vmem:[%s224_s28 + $0x8] sm:$0xff] %v850_v32   ;;  %v845_v39 = vpack.c.bf16 %v638_v31, %v637_v46 }
 0x10c   : > { %v914_v34 = vpop.f32.mrf.mxu1 }
 0x10d   : > { %846 = vst [vmem:[%s224_s28] sm:$0xff] %v845_v39   ;;  %v631_v10 = vadd.f32 %v914_v34, %v750_v37 }
 0x10e   : > { %v622_v44 = vpop.f32.mrf.mxu1 }
 0x10f   : > { %v623_v45 = vadd.f32 %v750_v37, %v622_v44  ;;  %v643_v23 = vmax.f32 %v631_v10, 0.0 }
 0x110   : > { %v915_v15 = vpop.f32.mrf.mxu1 }
 0x111   : > { %v634_v33 = vadd.f32 %v915_v15, %v750_v37  ;;  %v641_v35 = vmax.f32 %v623_v45, 0.0 }
 0x112   : > { %v625_v18 = vpop.f32.mrf.mxu1 }
 0x113   : > { %v644_v49 = vmax.f32 %v634_v33, 0.0  ;;  %v626_v40 = vadd.f32 %v750_v37, %v625_v18 }
 0x115   : > { %v860_v50 = vpack.c.bf16 %v644_v49, %v643_v23  ;;  %v642_v28 = vmax.f32 %v626_v40, 0.0 }
 0x117   : > { %879 = vst [vmem:[%s224_s28 + $0x18] sm:$0xff] %v860_v50   ;;  %v855_v16 = vpack.c.bf16 %v642_v28, %v641_v35 }
 0x119   : > { %878 = vst [vmem:[%s224_s28 + $0x10] sm:$0xff] %v855_v16  }
 0x11a PF: > { %s15_s18 = sadd.s32 1, %s955_s18  }
 0x11b   : > { %p12_p4 = scmp.ge.s32.totalorder %s15_s18, 4  }
 0x11d   :  { %14 = sbr.rel (!%p12_p4) target bundleno = 1 (0x1), region = 70 }

// kernel: mobilenet_v1_forward.8
= control target key start
LH: loop header
LB: loop body
LE: loop exit
PB: predicated region body
PF: predicated region fallthrough
CT: control target
= control target key end

     0   :  { %s712_s18 = smov 0   ;;  %s868_s0 = inlined_call_operand.vmem [shape: bf16[2,108,128], index: 0, kind: input, shape index: {}]   ;;  %s869_s1 = inlined_call_operand.vmem [shape: f32[9,128], index: 1, kind: input, shape index: {}]   ;;  %s870_s2 = inlined_call_operand.vmem [shape: f32[1,128], index: 2, kind: input, shape index: {}]   ;;  %s871_s3 = inlined_call_operand.vmem [shape: bf16[128,128], index: 3, kind: input, shape index: {}]   ;;  %s872_s4 = inlined_call_operand.vmem [shape: f32[1,128], index: 4, kind: input, shape index: {}]   ;;  %s873_s5 = inlined_call_operand.vmem [shape: bf16[2,16,128], index: 5, kind: output, shape index: {}]  }
   0x1 LB: > { %s589_s19 = sadd.s32 4294967295, %s678_s18   ;;  %p593_p0 = scmp.ge.s32.totalorder %s678_s18, 1  ;;  %s678_s18 = sphi %s712_s18, %s15_s18  }
   0x2   : > { %p187_p1 = scmp.lt.s32.totalorder %s678_s18, 3 }
   0x4   : > { %p188_p2 = pnand %p593_p0, %p187_p1 }
   0x5   : > { %p215_p3 = scmp.lt.s32.totalorder (!%p188_p2), %s589_s19, 1 }
   0x6   : > { %191 = sbr.rel (%p188_p2) target bundleno = 257 (0x101), region = 40 }
   0xb   : > { %v664_v0 = vld [vmem:[%s871_s3 + $0x38] sm:$0xff]   ;;  %v232_v1 = vlaneseq  ;;  %v680_v2 = vmov 0.0   ;;  %v665_v3 = vld [vmem:[%s871_s3 + $0x30] sm:$0xff]   ;;  %vm681_vm0 = vmmov 0   ;;  %s875_s19 = smov (!%p215_p3, %s589_s19), 1  ;;  %v666_v6 = vld [vmem:[%s871_s3 + $0x28] sm:$0xff]  }
   0xc   : > { %633 = vmatprep.subr.bf16.mxu0 %v680_v2  ;;  %649 = vmatprep.mubr.msk.bf16.mxu0 %vm681_vm0, %v680_v2  ;;  %s653_s26 = smul.u32 56, %s875_s19  ;;  %v667_v8 = vld [vmem:[%s871_s3 + $0x20] sm:$0xff]   ;;  %v668_v38 = vld [vmem:[%s871_s3 + $0x18] sm:$0xff]   ;;  %v669_v61 = vld [vmem:[%s871_s3 + $0x10] sm:$0xff]   ;;  %vm333_vm1 = vcmask 1043456   ;;  %s612_s25 = sshll.u32 %s875_s19, 3 }
   0xd   : > { %634 = vmatpush3.bf16.msra.mxu0 %v664_v0  ;;  %v729_v4 = vshrl.u32 %v232_v1, 7  ;;  %v751_v9 = vld [vmem:[%s869_s1] sm:$0xff]  ;;  %s224_s28 = scalar_lea.vmem %s873_s5, %s612_s25 }
   0xe   : > { %635 = vmatprep.subr.bf16.mxu0 %v680_v2  ;;  %s746_s6 = scalar_lea.vmem %s868_s0, %s653_s26 }
   0xf   : > { %v234_v5 = vsub.s32 0, %v729_v4  ;;  %v246_v7 = vsub.s32 1, %v729_v4  ;;  %v257_v10 = vsub.s32 2, %v729_v4  ;;  %v755_v11 = vld [vmem:[%s746_s6] sm:$0xff]   ;;  %v238_v13 = vld [vmem:[%s746_s6 + $0x8] sm:$0xc] }
  0x10   : > { %v760_v14 = vld [vmem:[%s746_s6 + $0xc] sm:$0xff]   ;;  %v617_v15 = vunpack.c.l.bf16 %v755_v11  ;;  %v241_v17 = vunpack.c.l.bf16 %v238_v13  ;;  %v766_v19 = vld [vmem:[%s746_s6 + $0x14] sm:$0xff]   ;;  %v261_v20 = vld [vmem:[%s746_s6 + $0x1c] sm:$0xc]  ;;  %v269_v21 = vsub.s32 3, %v729_v4  ;;  %v618_v22 = vunpack.c.h.bf16 %v755_v11 }
  0x11   : > { %636 = vmatpush3.bf16.msra.mxu0 %v665_v3  ;;  %v235_v12 = vrot.slane %v751_v9, %v234_v5  ;;  %v240_v16 = vld [vmem:[%s746_s6 + $0x10] sm:$0x3]  ;;  %v247_v18 = vrot.slane %v751_v9, %v246_v7  ;;  %v262_v24 = vld [vmem:[%s746_s6 + $0x20] ss:$8 sps:$4 sm:$0xff]   ;;  %v282_v25 = vsub.s32 4, %v729_v4  ;;  %v295_v26 = vsub.s32 5, %v729_v4 }
  0x12   : > { %637 = vmatprep.subr.bf16.mxu0 %v680_v2  ;;  %v243_v23 = vunpack.c.l.bf16 %v240_v16  ;;  %v242_v27 = vunpack.c.l.bf16 %v760_v14  ;;  %v253_v28 = vunpack.c.l.bf16 %v766_v19  ;;  %v254_v29 = vunpack.c.h.bf16 %v766_v19  ;;  %v263_v31 = vld [vmem:[%s746_s6 + $0x24] sm:$0x3]  ;;  %v274_v32 = vld [vmem:[%s746_s6 + $0x24] sm:$0xc]  ;;  %v276_v36 = vld [vmem:[%s746_s6 + $0x2c] sm:$0x3] }
  0x13   : > { %v258_v30 = vrot.slane %v751_v9, %v257_v10  ;;  %v781_v33 = vmul.f32 %v617_v15, %v235_v12  ;;  %v785_v34 = vmul.f32 %v618_v22, %v235_v12  ;;  %v264_v35 = vunpack.c.l.bf16 %v261_v20  ;;  %v287_v43 = vld [vmem:[%s746_s6 + $0x2c] sm:$0xc]  ;;  %v288_v44 = vld [vmem:[%s746_s6 + $0x30] sm:$0xf]  ;;  %v289_v49 = vld [vmem:[%s746_s6 + $0x34] sm:$0x3] }
  0x14   : > { %v306_v37 = vsub.s32 6, %v729_v4  ;;  %v792_v39 = vmul.f32 %v247_v18, %v241_v17  ;;  %v796_v40 = vmul.f32 %v247_v18, %v242_v27  ;;  %v265_v41 = vunpack.c.l.bf16 %v262_v24  ;;  %v300_v50 = vld [vmem:[%s746_s6] sm:$0xc]  ;;  %v301_v59 = vld [vmem:[%s746_s6 + $0x8] sm:$0x3] }
  0x15   : > { %638 = vmatpush3.bf16.msra.mxu0 %v666_v6  ;;  %v270_v42 = vrot.slane %v751_v9, %v269_v21  ;;  %v250_v45 = vmul.f32 %v247_v18, %v243_v23  ;;  %v266_v46 = vunpack.c.l.bf16 %v263_v31  ;;  %v277_v47 = vunpack.c.l.bf16 %v274_v32  ;;  %v319_v60 = vld [vmem:[%s746_s6 + $0x14] sm:$0xc]  ;;  %v320_v3 = vld [vmem:[%s746_s6 + $0x1c] sm:$0x3]  ;;  %v670_v21 = vld [vmem:[%s871_s3 + $0x8] sm:$0xff]  }
  0x16   : > { %639 = vmatprep.subr.bf16.mxu0 %v680_v2  ;;  %v283_v48 = vrot.slane %v751_v9, %v282_v25  ;;  %v805_v51 = vmul.f32 %v258_v30, %v253_v28  ;;  %v809_v52 = vmul.f32 %v258_v30, %v254_v29  ;;  %v278_v53 = vunpack.c.h.bf16 %v262_v24  ;;  %v597_v23 = vld [vmem:[%s869_s1 + $0x8] ss:$0 sm:$0xff] }
  0x17   : > { %v279_v54 = vunpack.c.l.bf16 %v276_v36  ;;  %v271_v55 = vmul.f32 %v270_v42, %v264_v35  ;;  %v272_v56 = vmul.f32 %v270_v42, %v265_v41  ;;  %v290_v57 = vunpack.c.l.bf16 %v287_v43 }
  0x18   : > { %v291_v58 = vunpack.c.l.bf16 %v288_v44  ;;  %v292_v62 = vunpack.c.l.bf16 %v289_v49  ;;  %v296_v63 = vrot.slane %v751_v9, %v295_v26  ;;  %v302_v0 = vunpack.c.l.bf16 %v300_v50 }
  0x19   : > { %640 = vmatpush3.bf16.msra.mxu0 %v667_v8  ;;  %v307_v1 = vrot.slane %v751_v9, %v306_v37  ;;  %v273_v5 = vmul.f32 %v270_v42, %v266_v46  ;;  %v284_v6 = vmul.f32 %v283_v48, %v277_v47  ;;  %v312_v7 = vunpack.c.h.bf16 %v760_v14  ;;  %v671_v14 = vld [vmem:[%s871_s3] sm:$0xff]  }
  0x1a   : > { %641 = vmatprep.subr.bf16.mxu0 %v680_v2  ;;  %v315_v8 = vsub.s32 7, %v729_v4  ;;  %v285_v10 = vmul.f32 %v283_v48, %v278_v53  ;;  %v286_v12 = vmul.f32 %v283_v48, %v279_v54  ;;  %v303_v13 = vunpack.c.l.bf16 %v301_v59 }
  0x1b   : > { %v321_v15 = vunpack.c.l.bf16 %v319_v60  ;;  %v297_v16 = vmul.f32 %v296_v63, %v290_v57  ;;  %v298_v17 = vmul.f32 %v296_v63, %v291_v58  ;;  %v322_v20 = vunpack.c.l.bf16 %v320_v3 }
  0x1c   : > { %v316_v18 = vrot.slane %v751_v9, %v315_v8  ;;  %v299_v24 = vmul.f32 %v296_v63, %v292_v62  ;;  %v308_v4 = vmul.f32 %v307_v1, %v302_v0  ;;  %v309_v25 = vmul.f32 %v618_v22, %v307_v1 }
  0x1d   : > { %642 = vmatpush3.bf16.msra.mxu0 %v668_v38  ;;  %v334_v26 = vrot.slane %v792_v39, 4  ;;  %v335_v30 = vrot.slane %v796_v40, 4  ;;  %v337_v31 = vrot.slane %v250_v45, 4  ;;  %v346_v32 = vrot.slane %v271_v55, 4 }
  0x1e   : > { %643 = vmatprep.subr.bf16.mxu0 %v680_v2  ;;  %v317_v9 = vmul.f32 %v316_v18, %v242_v27  ;;  %v318_v28 = vmul.f32 %v316_v18, %v312_v7  ;;  %v347_v35 = vrot.slane %v272_v56, 4  ;;  %v349_v36 = vrot.slane %v273_v5, 4  ;;  %v598_v5 = vld [vmem:[%s870_s2] ss:$0 sm:$0xff] }
  0x1f   : > { %v310_v37 = vmul.f32 %v307_v1, %v303_v13  ;;  %v327_v38 = vmul.f32 %v597_v23, %v321_v15  ;;  %v336_v11 = vsel %vm333_vm1, %v334_v26, %v335_v30  ;;  %v338_v22 = vsel %vm333_vm1, %v335_v30, %v337_v31 }
  0x20   : > { %v328_v27 = vmul.f32 %v597_v23, %v254_v29  ;;  %v329_v39 = vmul.f32 %v597_v23, %v322_v20  ;;  %v348_v40 = vsel %vm333_vm1, %v346_v32, %v347_v35  ;;  %v350_v41 = vsel %vm333_vm1, %v347_v35, %v349_v36 }
  0x21   : > { %644 = vmatpush3.bf16.msra.mxu0 %v669_v61  ;;  %v355_v42 = vadd.f32 %v297_v16, %v284_v6  ;;  %v357_v43 = vadd.f32 %v299_v24, %v286_v12  ;;  %v360_v44 = vrot.slane %v317_v9, 4  ;;  %v361_v45 = vrot.slane %v318_v28, 4  ;;  %v599_v16 = vld [vmem:[%s872_s4] ss:$0 sm:$0xff] }
  0x22   : > { %645 = vmatprep.subr.bf16.mxu0 %v680_v2  ;;  %v341_v46 = vadd.f32 %v336_v11, %v781_v33  ;;  %v342_v47 = vadd.f32 %v338_v22, %v785_v34  ;;  %v353_v48 = vadd.f32 %v348_v40, %v805_v51  ;;  %v356_v49 = vadd.f32 %v298_v17, %v285_v10 }
  0x23   : > { %v354_v19 = vadd.f32 %v350_v41, %v809_v52  ;;  %v362_v29 = vsel %vm333_vm1, %v360_v44, %v361_v45  ;;  %v366_v50 = vadd.f32 %v360_v44, %v308_v4  ;;  %v368_v53 = vadd.f32 %v361_v45, %v310_v37 }
  0x24   : > { %v367_v54 = vadd.f32 %v362_v29, %v309_v25  ;;  %v389_v57 = vrot.slane %v327_v38, 4  ;;  %v390_v58 = vrot.slane %v328_v27, 4  ;;  %v392_v59 = vrot.slane %v329_v39, 4 }
  0x25   : > { %646 = vmatpush3.bf16.msra.mxu0 %v670_v21  ;;  %v373_v55 = vadd.f32 %v368_v53, %v357_v43  ;;  %v369_v33 = vadd.f32 %v353_v48, %v341_v46  ;;  %v370_v60 = vadd.f32 %v354_v19, %v342_v47 }
  0x26   : > { %647 = vmatprep.subr.bf16.mxu0 %v680_v2  ;;  %v371_v2 = vadd.f32 %v366_v50, %v355_v42  ;;  %v372_v56 = vadd.f32 %v367_v54, %v356_v49  ;;  %v391_v63 = vsel %vm333_vm1, %v389_v57, %v390_v58  ;;  %v393_v0 = vsel %vm333_vm1, %v390_v58, %v392_v59 }
  0x27   : > { %v380_v61 = vrot.slane %v373_v55, 4 }
  0x28   : > { %v377_v34 = vrot.slane %v371_v2, 4  ;;  %v378_v51 = vrot.slane %v372_v56, 4 }
  0x29   : > { %648 = vmatpush3.bf16.msra.mxu0 %v671_v14 }
  0x2a   : > { %v379_v62 = vsel %vm333_vm1, %v377_v34, %v378_v51  ;;  %v381_v52 = vsel %vm333_vm1, %v378_v51, %v380_v61 }
  0x2b   : > { %v384_v1 = vadd.f32 %v379_v62, %v369_v33  ;;  %v385_v3 = vadd.f32 %v381_v52, %v370_v60 }
  0x2d   : > { %v396_v6 = vadd.f32 %v391_v63, %v384_v1  ;;  %v397_v7 = vadd.f32 %v393_v0, %v385_v3 }
  0x2f   : > { %v405_v8 = vadd.f32 %v598_v5, %v396_v6  ;;  %v406_v10 = vadd.f32 %v598_v5, %v397_v7 }
  0x31   : > { %v407_v12 = vmax.f32 %v405_v8, 0.0  ;;  %v408_v13 = vmax.f32 %v406_v10, 0.0 }
  0x33   : > { %v409_v15 = vpack.c.bf16 %v408_v13, %v407_v12 }
  0x35   : > { %650 = vmatmul.mubr.bf16.vlgmr.msra.gmra.mxu0 %v409_v15 }
  0xf5   : > { %v515_v17 = vpop.f32.mrf.mxu0 }
  0xf6   : > { %v516_v20 = vadd.f32 %v599_v16, %v515_v17 }
  0xf7   : > { %v651_v18 = vpop.f32.mrf.mxu0 }
  0xf8   : > { %v522_v4 = vmax.f32 %v516_v20, 0.0 }
  0xf9   : > { %v518_v21 = vpop.f32.mrf.mxu0 }
  0xfa   : > { %v519_v23 = vadd.f32 %v599_v16, %v518_v21 }
  0xfb   : > { %v652_v24 = vpop.f32.mrf.mxu0 }
  0xfc   : > { %v523_v25 = vmax.f32 %v519_v23, 0.0 }
  0xfe   : > { %v622_v26 = vpack.c.bf16 %v523_v25, %v522_v4 }
 0x100   : > { %623 = vst [vmem:[%s224_s28] sm:$0xff] %v622_v26  }
 0x101 PF: > { %s15_s18 = sadd.s32 1, %s678_s18  }
 0x102   : > { %p12_p4 = scmp.ge.s32.totalorder %s15_s18, 4  }
 0x104   :  { %14 = sbr.rel (!%p12_p4) target bundleno = 1 (0x1), region = 70 }

// kernel: mobilenet_v1_forward.9
= control target key start
LH: loop header
LB: loop body
LE: loop exit
PB: predicated region body
PF: predicated region fallthrough
CT: control target
= control target key end

     0   :  { %s683_s18 = smov 0   ;;  %s799_s0 = inlined_call_operand.vmem [shape: bf16[2,72,128], index: 0, kind: input, shape index: {}]   ;;  %s800_s1 = inlined_call_operand.vmem [shape: f32[9,128], index: 1, kind: input, shape index: {}]   ;;  %s801_s2 = inlined_call_operand.vmem [shape: f32[1,128], index: 2, kind: input, shape index: {}]   ;;  %s802_s3 = inlined_call_operand.vmem [shape: bf16[128,128], index: 3, kind: input, shape index: {}]   ;;  %s803_s4 = inlined_call_operand.vmem [shape: f32[1,128], index: 4, kind: input, shape index: {}]   ;;  %s804_s5 = inlined_call_operand.vmem [shape: bf16[2,16,128], index: 5, kind: output, shape index: {}]  }
   0x1 LB: > { %s555_s19 = sadd.s32 4294967295, %s649_s18   ;;  %p559_p0 = scmp.ge.s32.totalorder %s649_s18, 1  ;;  %s649_s18 = sphi %s683_s18, %s15_s18  }
   0x2   : > { %p187_p1 = scmp.lt.s32.totalorder %s649_s18, 3 }
   0x4   : > { %p188_p2 = pnand %p559_p0, %p187_p1 }
   0x5   : > { %p215_p3 = scmp.lt.s32.totalorder (!%p188_p2), %s555_s19, 1 }
   0x6   : > { %191 = sbr.rel (%p188_p2) target bundleno = 254 (0xfe), region = 40 }
   0xb   : > { %v635_v0 = vld [vmem:[%s802_s3 + $0x38] sm:$0xff]   ;;  %v232_v1 = vlaneseq  ;;  %v651_v2 = vmov 0.0   ;;  %v636_v3 = vld [vmem:[%s802_s3 + $0x30] sm:$0xff]   ;;  %vm652_vm0 = vmmov 0   ;;  %s806_s19 = smov (!%p215_p3, %s555_s19), 1  ;;  %v637_v5 = vld [vmem:[%s802_s3 + $0x28] sm:$0xff]  }
   0xc   : > { %604 = vmatprep.subr.bf16.mxu0 %v651_v2  ;;  %620 = vmatprep.mubr.msk.bf16.mxu0 %vm652_vm0, %v651_v2  ;;  %s624_s26 = smul.u32 36, %s806_s19  ;;  %v638_v8 = vld [vmem:[%s802_s3 + $0x20] sm:$0xff]   ;;  %v639_v36 = vld [vmem:[%s802_s3 + $0x18] sm:$0xff]   ;;  %v640_v54 = vld [vmem:[%s802_s3 + $0x10] sm:$0xff]   ;;  %vm322_vm1 = vcmask 1043456   ;;  %s578_s25 = sshll.u32 %s806_s19, 3 }
   0xd   : > { %605 = vmatpush3.bf16.msra.mxu0 %v635_v0  ;;  %v702_v4 = vshrl.u32 %v232_v1, 7  ;;  %v722_v9 = vld [vmem:[%s800_s1] sm:$0xff]  ;;  %s224_s28 = scalar_lea.vmem %s804_s5, %s578_s25 }
   0xe   : > { %606 = vmatprep.subr.bf16.mxu0 %v651_v2  ;;  %s717_s6 = scalar_lea.vmem %s799_s0, %s624_s26 }
   0xf   : > { %v234_v6 = vsub.s32 0, %v702_v4  ;;  %v244_v7 = vsub.s32 1, %v702_v4  ;;  %v582_v10 = vld [vmem:[%s717_s6] sm:$0xff]   ;;  %v238_v11 = vld [vmem:[%s717_s6 + $0xc] sm:$0xff]   ;;  %v254_v12 = vsub.s32 2, %v702_v4  ;;  %v264_v13 = vsub.s32 3, %v702_v4 }
  0x10   : > { %v583_v14 = vunpack.c.l.bf16 %v582_v10  ;;  %v730_v16 = vld [vmem:[%s717_s6 + $0x18] sm:$0xff]   ;;  %v258_v17 = vld [vmem:[%s717_s6] sm:$0xc]  ;;  %v259_v18 = vld [vmem:[%s717_s6 + $0x8] sm:$0x3]  ;;  %v275_v19 = vsub.s32 4, %v702_v4  ;;  %v584_v24 = vunpack.c.h.bf16 %v582_v10  ;;  %v240_v25 = vunpack.c.l.bf16 %v238_v11 }
  0x11   : > { %607 = vmatpush3.bf16.msra.mxu0 %v636_v3  ;;  %v235_v15 = vrot.slane %v722_v9, %v234_v6  ;;  %v245_v20 = vrot.slane %v722_v9, %v244_v7  ;;  %v269_v21 = vld [vmem:[%s717_s6 + $0xc] sm:$0xc]  ;;  %v288_v22 = vsub.s32 5, %v702_v4  ;;  %v297_v23 = vsub.s32 6, %v702_v4  ;;  %v270_v28 = vld [vmem:[%s717_s6 + $0x14] sm:$0x3] }
  0x12   : > { %608 = vmatprep.subr.bf16.mxu0 %v651_v2  ;;  %v241_v26 = vunpack.c.h.bf16 %v238_v11  ;;  %v260_v27 = vunpack.c.l.bf16 %v258_v17  ;;  %v280_v29 = vld [vmem:[%s717_s6 + $0x18] sm:$0xc]  ;;  %v743_v30 = vld [vmem:[%s717_s6 + $0x1c] sm:$0xff]   ;;  %v587_v31 = vunpack.c.l.bf16 %v730_v16  ;;  %v588_v32 = vunpack.c.h.bf16 %v730_v16  ;;  %v293_v41 = vld [vmem:[%s717_s6 + $0x8] ss:$12 sps:$4 sm:$0xff]  }
  0x13   : > { %v261_v33 = vunpack.c.l.bf16 %v259_v18  ;;  %v265_v34 = vrot.slane %v722_v9, %v264_v13  ;;  %v282_v35 = vld [vmem:[%s717_s6 + $0x20] sm:$0x3]  ;;  %v236_v37 = vmul.f32 %v583_v14, %v235_v15  ;;  %v255_v38 = vrot.slane %v722_v9, %v254_v12 }
  0x14   : > { %v271_v39 = vunpack.c.l.bf16 %v269_v21  ;;  %v276_v40 = vrot.slane %v722_v9, %v275_v19  ;;  %v237_v42 = vmul.f32 %v584_v24, %v235_v15  ;;  %v272_v43 = vunpack.c.l.bf16 %v270_v28  ;;  %v642_v21 = vld [vmem:[%s802_s3] sm:$0xff]  }
  0x15   : > { %609 = vmatpush3.bf16.msra.mxu0 %v637_v5  ;;  %v283_v44 = vunpack.c.l.bf16 %v280_v29  ;;  %v284_v45 = vunpack.c.l.bf16 %v743_v30  ;;  %v246_v46 = vmul.f32 %v245_v20, %v240_v25  ;;  %v266_v47 = vmul.f32 %v265_v34, %v260_v27 }
  0x16   : > { %610 = vmatprep.subr.bf16.mxu0 %v651_v2  ;;  %v267_v48 = vmul.f32 %v584_v24, %v265_v34  ;;  %v285_v49 = vunpack.c.l.bf16 %v282_v35  ;;  %v268_v50 = vmul.f32 %v265_v34, %v261_v33  ;;  %v289_v51 = vrot.slane %v722_v9, %v288_v22 }
  0x17   : > { %v294_v52 = vunpack.c.l.bf16 %v293_v41  ;;  %v298_v53 = vrot.slane %v722_v9, %v297_v23  ;;  %v247_v55 = vmul.f32 %v245_v20, %v241_v26  ;;  %v277_v56 = vmul.f32 %v276_v40, %v271_v39 }
  0x18   : > { %v302_v57 = vunpack.c.h.bf16 %v293_v41  ;;  %v305_v58 = vsub.s32 7, %v702_v4  ;;  %v278_v59 = vmul.f32 %v276_v40, %v241_v26  ;;  %v279_v60 = vmul.f32 %v276_v40, %v272_v43  ;;  %v641_v4 = vld [vmem:[%s802_s3 + $0x8] sm:$0xff]   ;;  %v564_v43 = vld [vmem:[%s801_s2] ss:$0 sm:$0xff] }
  0x19   : > { %611 = vmatpush3.bf16.msra.mxu0 %v638_v8  ;;  %v290_v61 = vmul.f32 %v289_v51, %v283_v44  ;;  %v291_v62 = vmul.f32 %v289_v51, %v284_v45  ;;  %v292_v63 = vmul.f32 %v289_v51, %v285_v49  ;;  %v299_v0 = vmul.f32 %v584_v24, %v298_v53 }
  0x1a   : > { %612 = vmatprep.subr.bf16.mxu0 %v651_v2  ;;  %v300_v1 = vmul.f32 %v298_v53, %v294_v52  ;;  %v306_v3 = vrot.slane %v722_v9, %v305_v58  ;;  %v323_v5 = vrot.slane %v266_v47, 4  ;;  %v324_v6 = vrot.slane %v267_v48, 4 }
  0x1b   : > { %v326_v7 = vrot.slane %v268_v50, 4  ;;  %v256_v8 = vmul.f32 %v587_v31, %v255_v38  ;;  %v257_v10 = vmul.f32 %v588_v32, %v255_v38  ;;  %v332_v9 = vadd.f32 %v290_v61, %v277_v56  ;;  %v563_v31 = vld [vmem:[%s800_s1 + $0x8] ss:$0 sm:$0xff] }
  0x1c   : > { %v307_v11 = vmul.f32 %v306_v3, %v241_v26  ;;  %v308_v12 = vmul.f32 %v306_v3, %v302_v57  ;;  %v325_v13 = vsel %vm322_vm1, %v323_v5, %v324_v6  ;;  %v334_v15 = vadd.f32 %v292_v63, %v279_v60 }
  0x1d   : > { %613 = vmatpush3.bf16.msra.mxu0 %v639_v36  ;;  %v327_v14 = vsel %vm322_vm1, %v324_v6, %v326_v7  ;;  %v317_v18 = vadd.f32 %v246_v46, %v236_v37  ;;  %v318_v19 = vadd.f32 %v247_v55, %v237_v42  ;;  %v333_v20 = vadd.f32 %v291_v62, %v278_v59 }
  0x1e   : > { %614 = vmatprep.subr.bf16.mxu0 %v651_v2  ;;  %v335_v16 = vadd.f32 %v307_v11, %v299_v0  ;;  %v336_v17 = vadd.f32 %v308_v12, %v300_v1  ;;  %v330_v22 = vadd.f32 %v325_v13, %v256_v8  ;;  %v331_v23 = vadd.f32 %v327_v14, %v257_v10 }
  0x1f   : > { %v310_v26 = vunpack.c.h.bf16 %v743_v30 }
  0x20   : > { %v341_v24 = vrot.slane %v335_v16, 4  ;;  %v342_v25 = vrot.slane %v336_v17, 4  ;;  %v337_v33 = vadd.f32 %v330_v22, %v317_v18  ;;  %v338_v34 = vadd.f32 %v331_v23, %v318_v19 }
  0x21   : > { %615 = vmatpush3.bf16.msra.mxu0 %v640_v54  ;;  %v316_v38 = vmul.f32 %v563_v31, %v310_v26 }
  0x22   : > { %616 = vmatprep.subr.bf16.mxu0 %v651_v2  ;;  %v343_v27 = vsel %vm322_vm1, %v341_v24, %v342_v25  ;;  %v347_v28 = vadd.f32 %v341_v24, %v332_v9  ;;  %v349_v29 = vadd.f32 %v342_v25, %v334_v15 }
  0x23   : > { %v348_v32 = vadd.f32 %v343_v27, %v333_v20 }
  0x24   : > { %v353_v35 = vrot.slane %v347_v28, 4  ;;  %v356_v36 = vrot.slane %v349_v29, 4 }
  0x25   : > { %617 = vmatpush3.bf16.msra.mxu0 %v641_v4  ;;  %v354_v37 = vrot.slane %v348_v32, 4 }
  0x26   : > { %618 = vmatprep.subr.bf16.mxu0 %v651_v2  ;;  %v315_v2 = vmul.f32 %v563_v31, %v284_v45  ;;  %v565_v45 = vld [vmem:[%s803_s4] ss:$0 sm:$0xff] }
  0x27   : > { %v355_v39 = vsel %vm322_vm1, %v353_v35, %v354_v37  ;;  %v357_v40 = vsel %vm322_vm1, %v354_v37, %v356_v36 }
  0x28   : > { %v360_v41 = vadd.f32 %v355_v39, %v337_v33  ;;  %v361_v42 = vadd.f32 %v357_v40, %v338_v34 }
  0x29   : > { %619 = vmatpush3.bf16.msra.mxu0 %v642_v21 }
  0x2a   : > { %v362_v44 = vadd.f32 %v360_v41, %v315_v2  ;;  %v363_v46 = vadd.f32 %v361_v42, %v316_v38 }
  0x2c   : > { %v371_v47 = vadd.f32 %v564_v43, %v362_v44  ;;  %v372_v48 = vadd.f32 %v564_v43, %v363_v46 }
  0x2e   : > { %v373_v49 = vmax.f32 %v371_v47, 0.0  ;;  %v374_v50 = vmax.f32 %v372_v48, 0.0 }
  0x30   : > { %v375_v30 = vpack.c.bf16 %v374_v50, %v373_v49 }
  0x32   : > { %621 = vmatmul.mubr.bf16.vlgmr.msra.gmra.mxu0 %v375_v30 }
  0xf2   : > { %v481_v51 = vpop.f32.mrf.mxu0 }
  0xf3   : > { %v482_v53 = vadd.f32 %v565_v45, %v481_v51 }
  0xf4   : > { %v622_v52 = vpop.f32.mrf.mxu0 }
  0xf5   : > { %v488_v57 = vmax.f32 %v482_v53, 0.0 }
  0xf6   : > { %v484_v54 = vpop.f32.mrf.mxu0 }
  0xf7   : > { %v485_v55 = vadd.f32 %v565_v45, %v484_v54 }
  0xf8   : > { %v623_v56 = vpop.f32.mrf.mxu0 }
  0xf9   : > { %v489_v58 = vmax.f32 %v485_v55, 0.0 }
  0xfb   : > { %v592_v59 = vpack.c.bf16 %v489_v58, %v488_v57 }
  0xfd   : > { %593 = vst [vmem:[%s224_s28] sm:$0xff] %v592_v59  }
  0xfe PF: > { %s15_s18 = sadd.s32 1, %s649_s18  }
  0xff   : > { %p12_p4 = scmp.ge.s32.totalorder %s15_s18, 4  }
 0x101   :  { %14 = sbr.rel (!%p12_p4) target bundleno = 1 (0x1), region = 70 }

// kernel: mobilenet_v1_forward.11
= control target key start
LH: loop header
LB: loop body
LE: loop exit
PB: predicated region body
PF: predicated region fallthrough
CT: control target
= control target key end

     0   :  { %v193_v0 = vmov 0.0   ;;  %vm194_vm0 = vmmov 0   ;;  %s248_s1 = inlined_call_operand.vmem [shape: bf16[128,128], index: 1, kind: input, shape index: {}]   ;;  %s249_s0 = inlined_call_operand.vmem [shape: bf16[8,128], index: 0, kind: input, shape index: {}]   ;;  %s250_s2 = inlined_call_operand.vmem [shape: f32[1,128], index: 2, kind: input, shape index: {}]   ;;  %s251_s3 = inlined_call_operand.vmem [shape: f32[8,128], index: 3, kind: output, shape index: {}]  }
   0x1   :  { %163 = vmatprep.subr.bf16.mxu0 %v193_v0  ;;  %v185_v1 = vld [vmem:[%s248_s1 + $0x38] sm:$0xff]   ;;  %179 = vmatprep.mubr.msk.bf16.mxu0 %vm194_vm0, %v193_v0  ;;  %v186_v2 = vld [vmem:[%s248_s1 + $0x30] sm:$0xff]   ;;  %v187_v3 = vld [vmem:[%s248_s1 + $0x28] sm:$0xff]  }
   0x2   :  { %164 = vmatpush3.bf16.msra.mxu0 %v185_v1  ;;  %v188_v4 = vld [vmem:[%s248_s1 + $0x20] sm:$0xff]   ;;  %v189_v5 = vld [vmem:[%s248_s1 + $0x18] sm:$0xff]   ;;  %v190_v6 = vld [vmem:[%s248_s1 + $0x10] sm:$0xff]  }
   0x3   :  { %165 = vmatprep.subr.bf16.mxu0 %v193_v0  ;;  %v191_v7 = vld [vmem:[%s248_s1 + $0x8] sm:$0xff]   ;;  %v192_v8 = vld [vmem:[%s248_s1] sm:$0xff]  }
   0x4   :  { %v21_v9 = vld [vmem:[%s249_s0] sm:$0xf] }
   0x5   :  { %v153_v10 = vld [vmem:[%s250_s2] ss:$0 sm:$0xff] }
   0x6   :  { %166 = vmatpush3.bf16.msra.mxu0 %v186_v2 }
   0x7   :  { %167 = vmatprep.subr.bf16.mxu0 %v193_v0 }
   0xa   :  { %168 = vmatpush3.bf16.msra.mxu0 %v187_v3 }
   0xb   :  { %169 = vmatprep.subr.bf16.mxu0 %v193_v0 }
   0xe   :  { %170 = vmatpush3.bf16.msra.mxu0 %v188_v4 }
   0xf   :  { %171 = vmatprep.subr.bf16.mxu0 %v193_v0 }
  0x12   :  { %172 = vmatpush3.bf16.msra.mxu0 %v189_v5 }
  0x13   :  { %173 = vmatprep.subr.bf16.mxu0 %v193_v0 }
  0x16   :  { %174 = vmatpush3.bf16.msra.mxu0 %v190_v6 }
  0x17   :  { %175 = vmatprep.subr.bf16.mxu0 %v193_v0 }
  0x1a   :  { %176 = vmatpush3.bf16.msra.mxu0 %v191_v7 }
  0x1b   :  { %177 = vmatprep.subr.bf16.mxu0 %v193_v0 }
  0x1e   :  { %178 = vmatpush3.bf16.msra.mxu0 %v192_v8 }
  0x21   :  { %180 = vmatmul.mubr.bf16.vlgmr.msra.gmra.mxu0 %v21_v9 }
  0xe1   :  { %v120_v11 = vpop.f32.mrf.mxu0 }
  0xe2   :  { %v139_v12 = vadd.f32 %v153_v10, %v120_v11 }
  0xe3   :  { %v181_v13 = vpop.f32.mrf.mxu0 }
  0xe4   :  { %140 = vst [vmem:[%s251_s3] sm:$0xff] %v139_v12 }
  0xe5   :  { %v123_v14 = vpop.f32.mrf.mxu0 }
  0xe7   :  { %v182_v15 = vpop.f32.mrf.mxu0 }

// kernel: mobilenet_v1_forward.10
= control target key start
LH: loop header
LB: loop body
LE: loop exit
PB: predicated region body
PF: predicated region fallthrough
CT: control target
= control target key end

     0   :  { %s634_s18 = smov 0   ;;  %s717_s0 = inlined_call_operand.vmem [shape: bf16[2,30,128], index: 0, kind: input, shape index: {}]   ;;  %s718_s1 = inlined_call_operand.vmem [shape: f32[9,128], index: 1, kind: input, shape index: {}]   ;;  %s719_s2 = inlined_call_operand.vmem [shape: f32[1,128], index: 2, kind: input, shape index: {}]   ;;  %s720_s3 = inlined_call_operand.vmem [shape: bf16[128,128], index: 3, kind: input, shape index: {}]   ;;  %s721_s4 = inlined_call_operand.vmem [shape: f32[1,128], index: 4, kind: input, shape index: {}]   ;;  %s722_s5 = inlined_call_operand.vmem [shape: bf16[2,1,128], index: 5, kind: output, shape index: {}]  }
   0x1 LB: > { %s526_s19 = sadd.s32 4294967295, %s600_s18   ;;  %p530_p0 = scmp.ge.s32.totalorder %s600_s18, 1  ;;  %s600_s18 = sphi %s634_s18, %s15_s18  }
   0x2   : > { %p187_p1 = scmp.lt.s32.totalorder %s600_s18, 3 }
   0x4   : > { %p188_p2 = pnand %p530_p0, %p187_p1 }
   0x5   : > { %p213_p3 = scmp.lt.s32.totalorder (!%p188_p2), %s526_s19, 1 }
   0x6   : > { %191 = sbr.rel (%p188_p2) target bundleno = 263 (0x107), region = 40 }
   0xb   : > { %v586_v0 = vld [vmem:[%s720_s3 + $0x38] sm:$0xff]   ;;  %v226_v1 = vlaneseq  ;;  %v602_v2 = vmov 0.0   ;;  %v587_v3 = vld [vmem:[%s720_s3 + $0x30] sm:$0xff]   ;;  %vm603_vm0 = vmmov 0   ;;  %s724_s19 = smov (!%p213_p3, %s526_s19), 1  ;;  %v588_v5 = vld [vmem:[%s720_s3 + $0x28] sm:$0xff]  }
   0xc   : > { %556 = vmatprep.subr.bf16.mxu0 %v602_v2  ;;  %572 = vmatprep.mubr.msk.bf16.mxu0 %vm603_vm0, %v602_v2  ;;  %s546_s26 = sshll.u32 %s724_s19, 4  ;;  %v589_v8 = vld [vmem:[%s720_s3 + $0x20] sm:$0xff]   ;;  %v590_v38 = vld [vmem:[%s720_s3 + $0x18] sm:$0xff]   ;;  %vm298_vm1 = vcmask 1041408   ;;  %v591_v55 = vld [vmem:[%s720_s3 + $0x10] sm:$0xff]   ;;  %vm462_vm2 = vcmask 1043456   ;;  %s220_s27 = scalar_lea.vmem %s722_s5, %s724_s19 }
   0xd   : > { %557 = vmatpush3.bf16.msra.mxu0 %v586_v0  ;;  %v227_v4 = vshrl.u32 %v226_v1, 7  ;;  %s661_s29 = scalar_lea.vmem %s717_s0, %s546_s26  ;;  %v222_v9 = vld [vmem:[%s718_s1] sm:$0xff]  ;;  %v533_v56 = vld [vmem:[%s718_s1 + $0x8] ss:$0 sm:$0xff]  ;;  %vm473_vm3 = vcmask 1040384  }
   0xe   : > { %558 = vmatprep.subr.bf16.mxu0 %v602_v2  ;;  %v224_v10 = vld [vmem:[%s661_s29] sm:$0x3]  ;;  %v231_v12 = vld [vmem:[%s661_s29] sm:$0x8]  ;;  %v232_v13 = vld [vmem:[%s661_s29 + $0x4] sm:$0x1] }
   0xf   : > { %v228_v6 = vsub.s32 0, %v227_v4  ;;  %v237_v7 = vsub.s32 1, %v227_v4  ;;  %v245_v11 = vsub.s32 2, %v227_v4  ;;  %v241_v15 = vld [vmem:[%s661_s29 + $0x4] sm:$0xc]  ;;  %v225_v16 = vunpack.c.l.bf16 %v224_v10 }
  0x10   : > { %v233_v18 = vunpack.c.l.bf16 %v231_v12  ;;  %v248_v19 = vld [vmem:[%s661_s29 + $0x8] sm:$0x6]  ;;  %v255_v20 = vld [vmem:[%s661_s29 + $0x8] sm:$0x8]  ;;  %v256_v21 = vld [vmem:[%s661_s29 + $0xc] sm:$0x1]  ;;  %v234_v22 = vunpack.c.l.bf16 %v232_v13  ;;  %v242_v23 = vunpack.c.l.bf16 %v241_v15 }
  0x11   : > { %559 = vmatpush3.bf16.msra.mxu0 %v587_v3  ;;  %v238_v14 = vrot.slane %v222_v9, %v237_v7  ;;  %v229_v17 = vrot.slane %v222_v9, %v228_v6  ;;  %v249_v24 = vunpack.c.l.bf16 %v248_v19  ;;  %v252_v25 = vsub.s32 3, %v227_v4  ;;  %v265_v26 = vld [vmem:[%s661_s29 + $0xc] sm:$0x6]  ;;  %v272_v27 = vld [vmem:[%s661_s29] sm:$0x6] }
  0x12   : > { %560 = vmatprep.subr.bf16.mxu0 %v602_v2  ;;  %v246_v29 = vrot.slane %v222_v9, %v245_v11  ;;  %v257_v30 = vunpack.c.l.bf16 %v255_v20  ;;  %v258_v31 = vunpack.c.l.bf16 %v256_v21  ;;  %v279_v32 = vld [vmem:[%s661_s29 + $0x4] sm:$0x3]  ;;  %v261_v34 = vsub.s32 4, %v227_v4  ;;  %v286_v37 = vld [vmem:[%s661_s29 + $0x4] sm:$0x8]  ;;  %v592_v6 = vld [vmem:[%s720_s3 + $0x8] sm:$0xff]  }
  0x13   : > { %v239_v28 = vmul.f32 %v238_v14, %v233_v18  ;;  %v253_v33 = vrot.slane %v222_v9, %v252_v25  ;;  %v266_v35 = vunpack.c.l.bf16 %v265_v26  ;;  %v269_v36 = vsub.s32 5, %v227_v4  ;;  %v287_v43 = vld [vmem:[%s661_s29 + $0x8] sm:$0x1]  ;;  %v534_v25 = vld [vmem:[%s719_s2] ss:$0 sm:$0xff] }
  0x14   : > { %v273_v39 = vunpack.c.l.bf16 %v272_v27  ;;  %v276_v40 = vsub.s32 6, %v227_v4  ;;  %v280_v41 = vunpack.c.l.bf16 %v279_v32  ;;  %v283_v42 = vsub.s32 7, %v227_v4 }
  0x15   : > { %561 = vmatpush3.bf16.msra.mxu0 %v588_v5  ;;  %v240_v44 = vmul.f32 %v238_v14, %v234_v22  ;;  %v254_v45 = vmul.f32 %v253_v33, %v249_v24  ;;  %v262_v46 = vrot.slane %v222_v9, %v261_v34  ;;  %v270_v47 = vrot.slane %v222_v9, %v269_v36  ;;  %v593_v14 = vld [vmem:[%s720_s3] sm:$0xff]  }
  0x16   : > { %562 = vmatprep.subr.bf16.mxu0 %v602_v2  ;;  %v247_v48 = vmul.f32 %v246_v29, %v242_v23  ;;  %v277_v49 = vrot.slane %v222_v9, %v276_v40  ;;  %v284_v50 = vrot.slane %v222_v9, %v283_v42  ;;  %v288_v51 = vunpack.c.l.bf16 %v286_v37 }
  0x17   : > { %v263_v52 = vmul.f32 %v262_v46, %v257_v30  ;;  %v271_v53 = vmul.f32 %v270_v47, %v266_v35  ;;  %v289_v54 = vunpack.c.l.bf16 %v287_v43  ;;  %v264_v57 = vmul.f32 %v262_v46, %v258_v31 }
  0x18   : > { %v278_v58 = vmul.f32 %v277_v49, %v273_v39  ;;  %v285_v59 = vmul.f32 %v284_v50, %v280_v41  ;;  %v299_v60 = vrot.slane %v239_v28, 6  ;;  %v230_v61 = vmul.f32 %v229_v17, %v225_v16 }
  0x19   : > { %563 = vmatpush3.bf16.msra.mxu0 %v589_v8  ;;  %v300_v62 = vrot.slane %v240_v44, 6  ;;  %v305_v63 = vrot.slane %v254_v45, 6  ;;  %v309_v0 = vrot.slane %v271_v53, 4  ;;  %v294_v3 = vmul.f32 %v533_v56, %v288_v51  ;;  %v476_v44 = vld [vmem:[%s220_s27] sm:$0x1] }
  0x1a   : > { %564 = vmatprep.subr.bf16.mxu0 %v602_v2  ;;  %v314_v1 = vrot.slane %v285_v59, 6  ;;  %v295_v7 = vmul.f32 %v533_v56, %v289_v54  ;;  %vm474_vm4 = vsmask.f32 256 }
  0x1b   : > { %v301_v4 = vsel %vm298_vm1, %v299_v60, %v300_v62  ;;  %v307_v5 = vadd.f32 %v305_v63, %v247_v48  ;;  %v311_v8 = vadd.f32 %v309_v0, %v263_v52  ;;  %v312_v9 = vadd.f32 %v309_v0, %v264_v57  ;;  %vm475_vm5 = vmand %vm473_vm3, %vm474_vm4 }
  0x1c   : > { %v316_v10 = vadd.f32 %v314_v1, %v278_v58  ;;  %v303_v11 = vadd.f32 %v301_v4, %v230_v61  ;;  %v335_v17 = vrot.slane %v294_v3, 6  ;;  %v336_v18 = vrot.slane %v295_v7, 6 }
  0x1d   : > { %565 = vmatpush3.bf16.msra.mxu0 %v590_v38  ;;  %v318_v12 = vrot.slane %v307_v5, 4 }
  0x1e   : > { %566 = vmatprep.subr.bf16.mxu0 %v602_v2  ;;  %v322_v13 = vrot.slane %v316_v10, 4  ;;  %v337_v23 = vsel %vm298_vm1, %v335_v17, %v336_v18 }
  0x1f   : > { %v320_v19 = vadd.f32 %v318_v12, %v303_v11 }
  0x20   : > { %v324_v15 = vadd.f32 %v322_v13, %v311_v8  ;;  %v325_v16 = vadd.f32 %v322_v13, %v312_v9 }
  0x21   : > { %567 = vmatpush3.bf16.msra.mxu0 %v591_v55 }
  0x22   : > { %568 = vmatprep.subr.bf16.mxu0 %v602_v2  ;;  %v328_v20 = vrot.slane %v324_v15, 6  ;;  %v329_v21 = vrot.slane %v325_v16, 6 }
  0x24   : > { %v330_v22 = vsel %vm298_vm1, %v328_v20, %v329_v21 }
  0x25   : > { %569 = vmatpush3.bf16.msra.mxu0 %v592_v6  ;;  %v332_v24 = vadd.f32 %v330_v22, %v320_v19 }
  0x26   : > { %570 = vmatprep.subr.bf16.mxu0 %v602_v2  ;;  %v535_v2 = vld [vmem:[%s721_s4] ss:$0 sm:$0xff] }
  0x27   : > { %v339_v26 = vadd.f32 %v337_v23, %v332_v24 }
  0x29   : > { %571 = vmatpush3.bf16.msra.mxu0 %v593_v14  ;;  %v347_v27 = vadd.f32 %v534_v25, %v339_v26 }
  0x2b   : > { %v348_v28 = vmax.f32 %v347_v27, 0.0 }
  0x2d   : > { %v349_v29 = vpack.c.bf16 %v348_v28, %v348_v28 }
  0x2f   : > { %573 = vmatmul.mubr.bf16.vlgmr.msra.gmra.mxu0 %v349_v29 }
  0xef   : > { %v455_v30 = vpop.f32.mrf.mxu0 }
  0xf0   : > { %v456_v31 = vadd.f32 %v535_v2, %v455_v30 }
  0xf1   : > { %v574_v32 = vpop.f32.mrf.mxu0 }
  0xf2   : > { %v461_v33 = vmax.f32 %v456_v31, 0.0 }
  0xf3   : > { %v458_v34 = vpop.f32.mrf.mxu0 }
  0xf4   : > { %v463_v35 = vsel %vm462_vm2, %v461_v33, 0.0 }
  0xf5   : > { %v464_v36 = vrot.slane %v463_v35, 4  ;;  %v575_v37 = vpop.f32.mrf.mxu0 }
  0xf7   : > { %v465_v38 = vadd.f32 %v464_v36, %v463_v35 }
  0xf9   : > { %v466_v39 = vrot.slane %v465_v38, 2 }
  0xfb   : > { %v467_v40 = vadd.f32 %v466_v39, %v465_v38 }
  0xfd   : > { %v468_v41 = vrot.slane %v467_v40, 1 }
  0xff   : > { %v469_v42 = vadd.f32 %v468_v41, %v467_v40 }
 0x101   : > { %v471_v43 = vmul.f32 0.25, %v469_v42 }
 0x103   : > { %v472_v45 = vpack.c.bf16 %v471_v43, %v471_v43 }
 0x105   : > { %v477_v46 = vsel %vm475_vm5, %v472_v45, %v476_v44 }
 0x106   : > { %478 = vst [vmem:[%s220_s27] sm:$0x1] %v477_v46 }
 0x107 PF: > { %s15_s18 = sadd.s32 1, %s600_s18  }
 0x108   : > { %p12_p4 = scmp.ge.s32.totalorder %s15_s18, 4  }
 0x10a   :  { %14 = sbr.rel (!%p12_p4) target bundleno = 1 (0x1), region = 70 }

</bundles_post_ra>
